<compile_context>
chip_gen: v7x
topology: tpu7x:2x2x1
jax: 0.10.0
libtpu: 0.0.40
codegen_flags: <defaults>
</compile_context>

<pallas_src>
import functools
import math

import jax
import jax.numpy as jnp
from jax.experimental import pallas as pl
from jax.experimental.pallas import tpu as pltpu

_SQRT2 = math.sqrt(2.0)
_CP = 128                       # channels padded 96 -> 128: lane-dense MXU operands & stores
_VMEM_LIMIT = 48 * 1024 * 1024  # explicit scoped-VMEM ceiling, safe on v5e/v6e/v7x


# -----------------------------------------------------------------------------
# Features_conv kernels
# -----------------------------------------------------------------------------
def _conv_stats_kernel(x_ref, top_ref, bot_ref, mean_ref, rstd_ref, w_ref,
                       conv_ref, stats_ref, *, prenorm):
    # x (1,TH,W,Cp) bf16 | top/bot halo rows (1,1,W,Cp) | mean/rstd (1,1,Cp) f32
    # w (3, 3*Cp, Cp) bf16 (dy-major, K = [dx0|dx1|dx2] each Cp wide)
    # conv out (1,TH,W,Cp) bf16 (pre-norm) | stats (1,1,2,Cp) f32 (per-tile sum / sumsq)
    _, TH, W, Cp = x_ref.shape

    # Assemble TH+2 rows; halo rows already realize ReflectionPad2d along H via the index maps.
    xt = jnp.concatenate([top_ref[0], x_ref[0], bot_ref[0]], axis=0)          # (TH+2, W, Cp)
    if prenorm:
        # InstanceNorm + ReLU of the *previous* ResnetBlock, fused here (pointwise, so it
        # commutes with the reflection padding and can be applied to halo rows too).
        xt = jnp.maximum((xt.astype(jnp.float32) - mean_ref[0]) * rstd_ref[0],
                         0.0).astype(jnp.bfloat16)

    # ReflectionPad2d along W in VMEM (col -1 := col 1, col W := col W-2), then pad the buffer
    # width to a multiple of 8 sublanes with dead columns (never enter any conv window).
    pad_cols = (-(W + 2)) % 8
    pieces = [xt[:, 1:2], xt, xt[:, W - 2:W - 1]]
    if pad_cols:
        pieces.append(jnp.zeros((TH + 2, pad_cols, Cp), xt.dtype))
    xp = jnp.concatenate(pieces, axis=1)                                      # (TH+2, >=W+2, Cp)

    # 3x3 conv as 3 MXU matmuls: for each dy, concat the three dx-shifted slabs along K (=3*Cp).
    acc = jnp.zeros((TH * W, Cp), jnp.float32)
    for dy in range(3):
        rows = xp[dy:dy + TH]                                                 # free major-axis slice
        op = jnp.concatenate([rows[:, 0:W], rows[:, 1:1 + W], rows[:, 2:2 + W]],
                             axis=-1)                                         # (TH, W, 3*Cp)
        acc = acc + jnp.dot(op.reshape(TH * W, 3 * Cp), w_ref[dy],
                            preferred_element_type=jnp.float32)

    conv_ref[0] = acc.reshape(TH, W, Cp).astype(conv_ref.dtype)
    # Single-pass InstanceNorm statistics (sum & sum of squares) from the f32 accumulator.
    s = jnp.sum(acc, axis=0, keepdims=True)                                   # (1, Cp)
    ss = jnp.sum(acc * acc, axis=0, keepdims=True)                            # (1, Cp)
    stats_ref[0, 0] = jnp.concatenate([s, ss], axis=0)                        # (2, Cp)


def _inorm_relu_kernel(x_ref, mean_ref, rstd_ref, o_ref):
    x = x_ref[0].astype(jnp.float32)
    o_ref[0] = jnp.maximum((x - mean_ref[0]) * rstd_ref[0], 0.0).astype(o_ref.dtype)


def _conv_block_pass(x, w_packed, mean_in, rstd_in, *, prenorm, th):
    """One ResnetBlock conv (optionally fused with the previous block's IN+ReLU) + stats."""
    N, H, W, Cp = x.shape
    T = H // th

    conv, stats = pl.pallas_call(
        functools.partial(_conv_stats_kernel, prenorm=prenorm),
        out_shape=(jax.ShapeDtypeStruct((N, H, W, Cp), jnp.bfloat16),
                   jax.ShapeDtypeStruct((N, T, 2, Cp), jnp.float32)),
        grid_spec=pltpu.PrefetchScalarGridSpec(
            num_scalar_prefetch=0,
            grid=(N, T),
            in_specs=[
                pl.BlockSpec((1, th, W, Cp), lambda n, t: (n, t, 0, 0)),
                # top halo row: t*th-1, clamped to 1 at the image top == reflection pad
                pl.BlockSpec((1, 1, W, Cp),
                             lambda n, t: (n, jnp.maximum(t * th - 1, 1), 0, 0)),
                # bottom halo row: (t+1)*th, clamped to H-2 at the image bottom == reflection pad
                pl.BlockSpec((1, 1, W, Cp),
                             lambda n, t: (n, jnp.minimum((t + 1) * th, H - 2), 0, 0)),
                pl.BlockSpec((1, 1, Cp), lambda n, t: (n, 0, 0)),
                pl.BlockSpec((1, 1, Cp), lambda n, t: (n, 0, 0)),
                pl.BlockSpec((3, 3 * Cp, Cp), lambda n, t: (0, 0, 0)),
            ],
            out_specs=(pl.BlockSpec((1, th, W, Cp), lambda n, t: (n, t, 0, 0)),
                       pl.BlockSpec((1, 1, 2, Cp), lambda n, t: (n, t, 0, 0))),
        ),
        compiler_params=pltpu.CompilerParams(
            dimension_semantics=("parallel", "parallel"),
            vmem_limit_bytes=_VMEM_LIMIT),
    )(x, x, x, mean_in, rstd_in, w_packed)

    # Tiny XLA reduction of the per-tile statistics -> per-image, per-channel mean / rstd.
    s = stats[:, :, 0, :].sum(axis=1)                       # (N, Cp)
    ss = stats[:, :, 1, :].sum(axis=1)
    cnt = float(H * W)
    mean = s / cnt
    var = jnp.maximum(ss / cnt - mean * mean, 0.0)
    rstd = jax.lax.rsqrt(var + 1e-5)                        # torch InstanceNorm2d: biased var, eps=1e-5
    return conv, mean[:, None, :], rstd[:, None, :]         # (N,1,Cp)


def _inorm_relu(x, mean, rstd, *, th):
    N, H, W, Cp = x.shape
    return pl.pallas_call(
        _inorm_relu_kernel,
        out_shape=jax.ShapeDtypeStruct((N, H, W, Cp), jnp.bfloat16),
        grid_spec=pltpu.PrefetchScalarGridSpec(
            num_scalar_prefetch=0,
            grid=(N, H // th),
            in_specs=[
                pl.BlockSpec((1, th, W, Cp), lambda n, t: (n, t, 0, 0)),
                pl.BlockSpec((1, 1, Cp), lambda n, t: (n, 0, 0)),
                pl.BlockSpec((1, 1, Cp), lambda n, t: (n, 0, 0)),
            ],
            out_specs=pl.BlockSpec((1, th, W, Cp), lambda n, t: (n, t, 0, 0)),
        ),
        compiler_params=pltpu.CompilerParams(
            dimension_semantics=("parallel", "parallel"),
            vmem_limit_bytes=_VMEM_LIMIT),
    )(x, mean, rstd)


def features_conv(planes_nchw, conv_weights, th=8):
    """planes_nchw: (N, C=96, H, W) f32; conv_weights: [w1, w2] each (Cout, Cin, 3, 3)."""
    N, C, H, W = planes_nchw.shape
    Cp = _CP
    assert th >= 2 and H % th == 0 and W % 8 == 0

    # Single NCHW->NHWC(+pad, bf16) conversion; everything between the three pallas_calls stays
    # in the padded NHWC bf16 layout (no per-stage XLA layout round trips).
    x = jnp.transpose(planes_nchw, (0, 2, 3, 1))
    x = jnp.pad(x, ((0, 0), (0, 0), (0, 0), (0, Cp - C))).astype(jnp.bfloat16)

    def pack(w):
        # torch (Cout, Cin, 3, 3) -> (3[dy], 3*Cp[dx-major, Cin], Cp[Cout]), zero-padded, bf16
        w = jnp.transpose(w, (2, 3, 1, 0))                          # (dy, dx, Cin, Cout)
        w = jnp.pad(w, ((0, 0), (0, 0), (0, Cp - C), (0, Cp - C)))
        return w.reshape(3, 3 * Cp, Cp).astype(jnp.bfloat16)

    w1, w2 = pack(conv_weights[0]), pack(conv_weights[1])
    zero_mean = jnp.zeros((N, 1, Cp), jnp.float32)
    unit_rstd = jnp.ones((N, 1, Cp), jnp.float32)

    # ResnetBlock 1: conv + stats (no pre-normalization of the raw input planes).
    conv1, m1, r1 = _conv_block_pass(x, w1, zero_mean, unit_rstd, prenorm=False, th=th)
    # ResnetBlock 2: block-1 IN+ReLU fused into the conv, then its own stats.
    conv2, m2, r2 = _conv_block_pass(conv1, w2, m1, r1, prenorm=True, th=th)
    # Final IN + ReLU of block 2.
    out = _inorm_relu(conv2, m2, r2, th=th)

    # One conversion back to the module's NCHW f32 interface (kept outside the hot path).
    return jnp.transpose(out[..., :C].astype(jnp.float32), (0, 3, 1, 2))


# -----------------------------------------------------------------------------
# OSGDecoder: plane-mean fused, FC 32->64, Softplus, split sigma / rgb heads
# -----------------------------------------------------------------------------
def _osg_decoder_kernel(feat_ref, w1_ref, b1_ref, wr_ref, br_ref, ws_ref, bs_ref,
                        rgb_ref, sigma_ref):
    # feat (1, 3, TM, 32) | out: rgb (1, TM, 32), sigma (1, TM, 1)
    x = jnp.mean(feat_ref[0].astype(jnp.float32), axis=0)                     # mean over 3 tri-planes
    h = jnp.dot(x, w1_ref[...], preferred_element_type=jnp.float32) + b1_ref[...]
    # torch.nn.Softplus (beta=1, threshold=20)
    h = jnp.where(h > 20.0, h, jnp.log1p(jnp.exp(jnp.minimum(h, 20.0))))
    sig = jnp.dot(h, ws_ref[...], preferred_element_type=jnp.float32) + bs_ref[...]
    rgb = jnp.dot(h, wr_ref[...], preferred_element_type=jnp.float32) + br_ref[...]
    rgb_ref[0] = jax.nn.sigmoid(rgb) * (1.0 + 2.0 * 0.001) - 0.001
    sigma_ref[0] = sig                                                        # raw (no activation)


def osg_decoder(sampled_features, params, tm=2048):
    """sampled_features: (N, 3, M, 32) -> {'rgb': (N, M, 32), 'sigma': (N, M, 1)}"""
    N, P, M, C = sampled_features.shape
    w1, b1, w2, b2 = params
    ws, bs = w2[:, :1], b2[:1]            # sigma head
    wr, br = w2[:, 1:], b2[1:]            # rgb head (32 wide)
    dr = wr.shape[1]
    tm = min(tm, M)
    assert M % tm == 0

    rgb, sigma = pl.pallas_call(
        _osg_decoder_kernel,
        out_shape=(jax.ShapeDtypeStruct((N, M, dr), jnp.float32),
                   jax.ShapeDtypeStruct((N, M, 1), jnp.float32)),
        grid_spec=pltpu.PrefetchScalarGridSpec(
            num_scalar_prefetch=0,
            grid=(N, M // tm),
            in_specs=[
                pl.BlockSpec((1, P, tm, C), lambda n, m: (n, 0, m, 0)),
                pl.BlockSpec(w1.shape, lambda n, m: (0, 0)),
                pl.BlockSpec((1, b1.shape[0]), lambda n, m: (0, 0)),
                pl.BlockSpec(wr.shape, lambda n, m: (0, 0)),
                pl.BlockSpec((1, dr), lambda n, m: (0, 0)),
                pl.BlockSpec(ws.shape, lambda n, m: (0, 0)),
                pl.BlockSpec((1, 1), lambda n, m: (0, 0)),
            ],
            out_specs=(pl.BlockSpec((1, tm, dr), lambda n, m: (n, m, 0)),
                       pl.BlockSpec((1, tm, 1), lambda n, m: (n, m, 0))),
        ),
        compiler_params=pltpu.CompilerParams(dimension_semantics=("parallel", "parallel")),
    )(sampled_features, w1, b1.reshape(1, -1), wr, br.reshape(1, -1), ws, bs.reshape(1, -1))
    return {"rgb": rgb, "sigma": sigma}


# -----------------------------------------------------------------------------
# OSGDecoder_sketch: plane-mean + harmonic embed fused, 4-layer MLP, sigmoid
# -----------------------------------------------------------------------------
def _osg_sketch_kernel(feat_ref, dir_ref, angw_ref, w1a_ref, w1s_ref, w1c_ref, b1_ref,
                       w2_ref, b2_ref, w3_ref, b3_ref, w4_ref, b4_ref, o_ref):
    # feat (1, 3, TM, 32) | dirs (1, TM, 3) | out (1, TM, 32)
    x = jnp.mean(feat_ref[0].astype(jnp.float32), axis=0)
    d = dir_ref[0]
    # HarmonicEmbedding(n=4, logspace=True, append_input=False): ang[:, 4c+f] = d[:, c] * 2^f,
    # output = [sin(12) | cos(12)]; sin/cos go to the EUP slot.
    ang = jnp.dot(d, angw_ref[...], preferred_element_type=jnp.float32)       # (TM, 12)
    sin_e, cos_e = jnp.sin(ang), jnp.cos(ang)
    # first FC over concat([x, sin, cos]) done as split matmuls (no lane concat needed)
    h = (jnp.dot(x, w1a_ref[...], preferred_element_type=jnp.float32)
         + jnp.dot(sin_e, w1s_ref[...], preferred_element_type=jnp.float32)
         + jnp.dot(cos_e, w1c_ref[...], preferred_element_type=jnp.float32)
         + b1_ref[...])
    h = jnp.maximum(h, 0.0) * _SQRT2                                          # bias_act relu gain
    h = jnp.maximum(jnp.dot(h, w2_ref[...], preferred_element_type=jnp.float32) + b2_ref[...], 0.0) * _SQRT2
    h = jnp.maximum(jnp.dot(h, w3_ref[...], preferred_element_type=jnp.float32) + b3_ref[...], 0.0) * _SQRT2
    y = jnp.dot(h, w4_ref[...], preferred_element_type=jnp.float32) + b4_ref[...]
    o_ref[0] = jax.nn.sigmoid(y) * (1.0 + 2.0 * 0.001) - 0.001


def osg_decoder_sketch(sampled_features, ray_directions, params, tm=2048):
    """sampled_features: (N, 3, M, 32); ray_directions: (N, M, 3) -> {'sketch': (N, M, 32)}"""
    N, P, M, C = sampled_features.shape
    w1a, w1b, b1, w2, b2, w3, b3, w4, b4 = params
    dout = w4.shape[1]                    # 32
    w1s, w1c = w1b[:12], w1b[12:]         # pytorch3d embed order: [sin(12) | cos(12)]
    ang_w = jnp.kron(jnp.eye(3, dtype=jnp.float32),
                     jnp.array([1.0, 2.0, 4.0, 8.0], jnp.float32).reshape(1, 4))  # (3, 12)
    tm = min(tm, M)
    assert M % tm == 0

    out = pl.pallas_call(
        _osg_sketch_kernel,
        out_shape=jax.ShapeDtypeStruct((N, M, dout), jnp.float32),
        grid_spec=pltpu.PrefetchScalarGridSpec(
            num_scalar_prefetch=0,
            grid=(N, M // tm),
            in_specs=[
                pl.BlockSpec((1, P, tm, C), lambda n, m: (n, 0, m, 0)),
                pl.BlockSpec((1, tm, 3), lambda n, m: (n, m, 0)),
                pl.BlockSpec((3, 12), lambda n, m: (0, 0)),
                pl.BlockSpec(w1a.shape, lambda n, m: (0, 0)),
                pl.BlockSpec((12, 64), lambda n, m: (0, 0)),
                pl.BlockSpec((12, 64), lambda n, m: (0, 0)),
                pl.BlockSpec((1, b1.shape[0]), lambda n, m: (0, 0)),
                pl.BlockSpec(w2.shape, lambda n, m: (0, 0)),
                pl.BlockSpec((1, b2.shape[0]), lambda n, m: (0, 0)),
                pl.BlockSpec(w3.shape, lambda n, m: (0, 0)),
                pl.BlockSpec((1, b3.shape[0]), lambda n, m: (0, 0)),
                pl.BlockSpec(w4.shape, lambda n, m: (0, 0)),
                pl.BlockSpec((1, dout), lambda n, m: (0, 0)),
            ],
            out_specs=pl.BlockSpec((1, tm, dout), lambda n, m: (n, m, 0)),
        ),
        compiler_params=pltpu.CompilerParams(dimension_semantics=("parallel", "parallel")),
    )(sampled_features, ray_directions, ang_w, w1a, w1s, w1c, b1.reshape(1, -1),
      w2, b2.reshape(1, -1), w3, b3.reshape(1, -1), w4, b4.reshape(1, -1))
    return {"sketch": out}


# -----------------------------------------------------------------------------
# Deterministic parameter construction (matches __init__ shapes; synthetic init)
# -----------------------------------------------------------------------------
def make_params(key):
    keys = jax.random.split(key, 8)
    k = iter(keys)

    # Features_conv: 2 ResnetBlocks, Conv2d(96, 96, 3) weights ~ N(0, 0.02) per weights_init.
    # Conv bias omitted: it is exactly cancelled by InstanceNorm2d(affine=False, no running stats).
    conv_weights = [0.02 * jax.random.normal(next(k), (96, 96, 3, 3), jnp.float32) for _ in range(2)]

    def fc(key_, fan_in, fan_out):
        # StyleGAN FullyConnectedLayer (lr_mul=1): effective weight = randn/sqrt(fan_in), bias = 0
        w = jax.random.normal(key_, (fan_in, fan_out), jnp.float32) / math.sqrt(fan_in)
        return w, jnp.zeros((fan_out,), jnp.float32)

    # OSGDecoder: FC(32, 64) -> Softplus -> FC(64, 33)
    w1, b1 = fc(next(k), 32, 64)
    w2, b2 = fc(next(k), 64, 33)
    dec_params = (w1, b1, w2, b2)

    # OSGDecoder_sketch: FC(56, 64) relu, FC(64, 64) relu, FC(64, 64) relu, FC(64, 32)
    w_full, sb1 = fc(next(k), 56, 64)
    sw1a, sw1b = w_full[:32], w_full[32:]          # split for [features | dir-embed] concat
    sw2, sb2 = fc(next(k), 64, 64)
    sw3, sb3 = fc(next(k), 64, 64)
    sw4, sb4 = fc(next(k), 64, 32)
    sketch_params = (sw1a, sw1b, sb1, sw2, sb2, sw3, sb3, sw4, sb4)

    return conv_weights, dec_params, sketch_params


# -----------------------------------------------------------------------------
# Driver
# -----------------------------------------------------------------------------
if __name__ == "__main__":
    key = jax.random.PRNGKey(0)
    k_planes, k_feat, k_dirs, k_params = jax.random.split(key, 4)

    N = 2          # batch
    H = W = 16     # (small) triplane spatial resolution (real model: 256)
    R = 16         # (small) neural rendering resolution (real model: 128)
    M = R * R      # rays per image -> 256

    # Synthetic stand-ins for the outputs of the external backbone / ray sampler / renderer sampling.
    planes = jax.random.normal(k_planes, (N, 96, H, W), jnp.float32)          # NCHW, 3*32 channels
    sampled_features = jax.random.normal(k_feat, (N, 3, M, 32), jnp.float32)  # per-plane samples
    ray_directions = jax.random.normal(k_dirs, (N, M, 3), jnp.float32)
    ray_directions = ray_directions / jnp.linalg.norm(ray_directions, axis=-1, keepdims=True)

    conv_weights, dec_params, sketch_params = make_params(k_params)

    # self.planes_sparse(planes)  -> Features_conv (row-tiled, bf16, two-pass InstanceNorm)
    planes_sketch = features_conv(planes, conv_weights, th=8)

    # self.decoder(...) — plane-mean fused in-kernel (reads the raw (N,3,M,32) features once)
    dec_out = osg_decoder(sampled_features, dec_params)

    # self.decoder_sketch(sampled_features, ray_directions)
    sketch_out = osg_decoder_sketch(sampled_features, ray_directions, sketch_params)

    jax.block_until_ready((planes_sketch, dec_out["rgb"], dec_out["sigma"], sketch_out["sketch"]))

    assert planes_sketch.shape == (N, 96, H, W)
    assert dec_out["rgb"].shape == (N, M, 32)
    assert dec_out["sigma"].shape == (N, M, 1)
    assert sketch_out["sketch"].shape == (N, M, 32)
    print("KERNEL_OK")
</pallas_src>

<mosaic_0001>
module attributes {stable_mosaic.version = 11 : i64} {
  func.func @_conv_stats_kernel(%arg0: i32, %arg1: i32, %arg2: memref<1x8x16x128xbf16, #tpu.memory_space<vmem>>, %arg3: memref<1x1x16x128xbf16, #tpu.memory_space<vmem>>, %arg4: memref<1x1x16x128xbf16, #tpu.memory_space<vmem>>, %arg5: memref<1x1x128xf32, #tpu.memory_space<vmem>>, %arg6: memref<1x1x128xf32, #tpu.memory_space<vmem>>, %arg7: memref<3x384x128xbf16, #tpu.memory_space<vmem>>, %arg8: memref<1x8x16x128xbf16, #tpu.memory_space<vmem>>, %arg9: memref<1x1x2x128xf32, #tpu.memory_space<vmem>>) attributes {dimension_semantics = [#tpu.dimension_semantics<parallel>, #tpu.dimension_semantics<parallel>], iteration_bounds = array<i64: 2, 2>, scalar_prefetch = 0 : i64, scratch_operands = 0 : i64, tpu.core_type = #tpu.core_type<tc>, window_params = [{transform_indices = @transform_0, window_bounds = array<i64: 1, 8, 16, 128>}, {transform_indices = @transform_1, window_bounds = array<i64: 1, 1, 16, 128>}, {transform_indices = @transform_2, window_bounds = array<i64: 1, 1, 16, 128>}, {transform_indices = @transform_3, window_bounds = array<i64: 1, 1, 128>}, {transform_indices = @transform_4, window_bounds = array<i64: 1, 1, 128>}, {pipeline_mode = #tpu.pipeline_mode<synchronous>, transform_indices = @transform_5, window_bounds = array<i64: 3, 384, 128>}, {transform_indices = @transform_6, window_bounds = array<i64: 1, 8, 16, 128>}, {transform_indices = @transform_7, window_bounds = array<i64: 1, 1, 2, 128>}]} {
    %c0 = arith.constant 0 : index
    %c0_0 = arith.constant 0 : index
    %c0_1 = arith.constant 0 : index
    %c0_2 = arith.constant 0 : index
    %0 = vector.load %arg3[%c0, %c0_0, %c0_1, %c0_2] : memref<1x1x16x128xbf16, #tpu.memory_space<vmem>>, vector<1x1x16x128xbf16>
    %1 = vector.shape_cast %0 : vector<1x1x16x128xbf16> to vector<1x16x128xbf16>
    %c0_3 = arith.constant 0 : index
    %c0_4 = arith.constant 0 : index
    %c0_5 = arith.constant 0 : index
    %c0_6 = arith.constant 0 : index
    %2 = vector.load %arg2[%c0_3, %c0_4, %c0_5, %c0_6] : memref<1x8x16x128xbf16, #tpu.memory_space<vmem>>, vector<1x8x16x128xbf16>
    %3 = vector.shape_cast %2 : vector<1x8x16x128xbf16> to vector<8x16x128xbf16>
    %c0_7 = arith.constant 0 : index
    %c0_8 = arith.constant 0 : index
    %c0_9 = arith.constant 0 : index
    %c0_10 = arith.constant 0 : index
    %4 = vector.load %arg4[%c0_7, %c0_8, %c0_9, %c0_10] : memref<1x1x16x128xbf16, #tpu.memory_space<vmem>>, vector<1x1x16x128xbf16>
    %5 = vector.shape_cast %4 : vector<1x1x16x128xbf16> to vector<1x16x128xbf16>
    %6 = tpu.concatenate %1, %3, %5 in 0 : vector<1x16x128xbf16>, vector<8x16x128xbf16>, vector<1x16x128xbf16> -> vector<10x16x128xbf16>
    %7 = vector.extract_strided_slice %6 {offsets = [0, 1, 0], sizes = [10, 1, 128], strides = [1, 1, 1]} : vector<10x16x128xbf16> to vector<10x1x128xbf16>
    %8 = vector.extract_strided_slice %6 {offsets = [0, 14, 0], sizes = [10, 1, 128], strides = [1, 1, 1]} : vector<10x16x128xbf16> to vector<10x1x128xbf16>
    %cst = arith.constant 0.000000e+00 : bf16
    %9 = vector.broadcast %cst : bf16 to vector<10x6x128xbf16>
    %10 = tpu.concatenate %7, %6, %8, %9 in 1 : vector<10x1x128xbf16>, vector<10x16x128xbf16>, vector<10x1x128xbf16>, vector<10x6x128xbf16> -> vector<10x24x128xbf16>
    %cst_11 = arith.constant 0.000000e+00 : f32
    %11 = vector.broadcast %cst_11 : f32 to vector<128x128xf32>
    %12 = vector.extract_strided_slice %10 {offsets = [0, 0, 0], sizes = [8, 24, 128], strides = [1, 1, 1]} : vector<10x24x128xbf16> to vector<8x24x128xbf16>
    %13 = vector.extract_strided_slice %12 {offsets = [0, 0, 0], sizes = [8, 16, 128], strides = [1, 1, 1]} : vector<8x24x128xbf16> to vector<8x16x128xbf16>
    %14 = vector.extract_strided_slice %12 {offsets = [0, 1, 0], sizes = [8, 16, 128], strides = [1, 1, 1]} : vector<8x24x128xbf16> to vector<8x16x128xbf16>
    %15 = vector.extract_strided_slice %12 {offsets = [0, 2, 0], sizes = [8, 16, 128], strides = [1, 1, 1]} : vector<8x24x128xbf16> to vector<8x16x128xbf16>
    %16 = tpu.concatenate %13, %14, %15 in 2 : vector<8x16x128xbf16>, vector<8x16x128xbf16>, vector<8x16x128xbf16> -> vector<8x16x384xbf16>
    %17 = vector.shape_cast %16 : vector<8x16x384xbf16> to vector<128x384xbf16>
    %c0_12 = arith.constant 0 : index
    %c0_13 = arith.constant 0 : index
    %c0_14 = arith.constant 0 : index
    %18 = vector.load %arg7[%c0_12, %c0_13, %c0_14] : memref<3x384x128xbf16, #tpu.memory_space<vmem>>, vector<1x384x128xbf16>
    %19 = vector.shape_cast %18 : vector<1x384x128xbf16> to vector<384x128xbf16>
    %cst_15 = arith.constant dense<0.000000e+00> : vector<128x128xf32>
    %20 = tpu.matmul %17, %19, %cst_15 {dimension_numbers = #tpu.dot_dimension_numbers<[1], [0], [0], [1], [0, 0, 1, 1], [], []>} : vector<128x384xbf16>, vector<384x128xbf16>, vector<128x128xf32> -> vector<128x128xf32>
    %21 = arith.addf %11, %20 : vector<128x128xf32>
    %22 = vector.extract_strided_slice %10 {offsets = [1, 0, 0], sizes = [8, 24, 128], strides = [1, 1, 1]} : vector<10x24x128xbf16> to vector<8x24x128xbf16>
    %23 = vector.extract_strided_slice %22 {offsets = [0, 0, 0], sizes = [8, 16, 128], strides = [1, 1, 1]} : vector<8x24x128xbf16> to vector<8x16x128xbf16>
    %24 = vector.extract_strided_slice %22 {offsets = [0, 1, 0], sizes = [8, 16, 128], strides = [1, 1, 1]} : vector<8x24x128xbf16> to vector<8x16x128xbf16>
    %25 = vector.extract_strided_slice %22 {offsets = [0, 2, 0], sizes = [8, 16, 128], strides = [1, 1, 1]} : vector<8x24x128xbf16> to vector<8x16x128xbf16>
    %26 = tpu.concatenate %23, %24, %25 in 2 : vector<8x16x128xbf16>, vector<8x16x128xbf16>, vector<8x16x128xbf16> -> vector<8x16x384xbf16>
    %27 = vector.shape_cast %26 : vector<8x16x384xbf16> to vector<128x384xbf16>
    %c1 = arith.constant 1 : index
    %c0_16 = arith.constant 0 : index
    %c0_17 = arith.constant 0 : index
    %28 = vector.load %arg7[%c1, %c0_16, %c0_17] : memref<3x384x128xbf16, #tpu.memory_space<vmem>>, vector<1x384x128xbf16>
    %29 = vector.shape_cast %28 : vector<1x384x128xbf16> to vector<384x128xbf16>
    %cst_18 = arith.constant dense<0.000000e+00> : vector<128x128xf32>
    %30 = tpu.matmul %27, %29, %cst_18 {dimension_numbers = #tpu.dot_dimension_numbers<[1], [0], [0], [1], [0, 0, 1, 1], [], []>} : vector<128x384xbf16>, vector<384x128xbf16>, vector<128x128xf32> -> vector<128x128xf32>
    %31 = arith.addf %21, %30 : vector<128x128xf32>
    %32 = vector.extract_strided_slice %10 {offsets = [2, 0, 0], sizes = [8, 24, 128], strides = [1, 1, 1]} : vector<10x24x128xbf16> to vector<8x24x128xbf16>
    %33 = vector.extract_strided_slice %32 {offsets = [0, 0, 0], sizes = [8, 16, 128], strides = [1, 1, 1]} : vector<8x24x128xbf16> to vector<8x16x128xbf16>
    %34 = vector.extract_strided_slice %32 {offsets = [0, 1, 0], sizes = [8, 16, 128], strides = [1, 1, 1]} : vector<8x24x128xbf16> to vector<8x16x128xbf16>
    %35 = vector.extract_strided_slice %32 {offsets = [0, 2, 0], sizes = [8, 16, 128], strides = [1, 1, 1]} : vector<8x24x128xbf16> to vector<8x16x128xbf16>
    %36 = tpu.concatenate %33, %34, %35 in 2 : vector<8x16x128xbf16>, vector<8x16x128xbf16>, vector<8x16x128xbf16> -> vector<8x16x384xbf16>
    %37 = vector.shape_cast %36 : vector<8x16x384xbf16> to vector<128x384xbf16>
    %c2 = arith.constant 2 : index
    %c0_19 = arith.constant 0 : index
    %c0_20 = arith.constant 0 : index
    %38 = vector.load %arg7[%c2, %c0_19, %c0_20] : memref<3x384x128xbf16, #tpu.memory_space<vmem>>, vector<1x384x128xbf16>
    %39 = vector.shape_cast %38 : vector<1x384x128xbf16> to vector<384x128xbf16>
    %cst_21 = arith.constant dense<0.000000e+00> : vector<128x128xf32>
    %40 = tpu.matmul %37, %39, %cst_21 {dimension_numbers = #tpu.dot_dimension_numbers<[1], [0], [0], [1], [0, 0, 1, 1], [], []>} : vector<128x384xbf16>, vector<384x128xbf16>, vector<128x128xf32> -> vector<128x128xf32>
    %41 = arith.addf %31, %40 : vector<128x128xf32>
    %42 = vector.shape_cast %41 : vector<128x128xf32> to vector<8x16x128xf32>
    %43 = arith.truncf %42 : vector<8x16x128xf32> to vector<8x16x128xbf16>
    %c0_22 = arith.constant 0 : index
    %c0_23 = arith.constant 0 : index
    %c0_24 = arith.constant 0 : index
    %c0_25 = arith.constant 0 : index
    %44 = vector.load %arg8[%c0_22, %c0_23, %c0_24, %c0_25] : memref<1x8x16x128xbf16, #tpu.memory_space<vmem>>, vector<1x8x16x128xbf16>
    %45 = vector.shape_cast %44 : vector<1x8x16x128xbf16> to vector<8x16x128xbf16>
    %46 = vector.shape_cast %43 : vector<8x16x128xbf16> to vector<1x8x16x128xbf16>
    tpu.vector_store %arg8[%c0_22, %c0_23, %c0_24, %c0_25], %46 {strides = array<i32>} : memref<1x8x16x128xbf16, #tpu.memory_space<vmem>>, vector<1x8x16x128xbf16>,
    %cst_26 = arith.constant dense<0.000000e+00> : vector<128xf32>
    %47 = vector.multi_reduction <add>, %41, %cst_26 [0] : vector<128x128xf32> to vector<128xf32>
    %48 = vector.shape_cast %47 : vector<128xf32> to vector<1x128xf32>
    %49 = arith.mulf %41, %41 : vector<128x128xf32>
    %cst_27 = arith.constant dense<0.000000e+00> : vector<128xf32>
    %50 = vector.multi_reduction <add>, %49, %cst_27 [0] : vector<128x128xf32> to vector<128xf32>
    %51 = vector.shape_cast %50 : vector<128xf32> to vector<1x128xf32>
    %52 = tpu.concatenate %48, %51 in 0 : vector<1x128xf32>, vector<1x128xf32> -> vector<2x128xf32>
    %c0_28 = arith.constant 0 : index
    %c0_29 = arith.constant 0 : index
    %c0_30 = arith.constant 0 : index
    %c0_31 = arith.constant 0 : index
    %53 = vector.load %arg9[%c0_28, %c0_29, %c0_30, %c0_31] : memref<1x1x2x128xf32, #tpu.memory_space<vmem>>, vector<1x1x2x128xf32>
    %54 = vector.shape_cast %53 : vector<1x1x2x128xf32> to vector<2x128xf32>
    %55 = vector.shape_cast %52 : vector<2x128xf32> to vector<1x1x2x128xf32>
    tpu.vector_store %arg9[%c0_28, %c0_29, %c0_30, %c0_31], %55 {strides = array<i32>} : memref<1x1x2x128xf32, #tpu.memory_space<vmem>>, vector<1x1x2x128xf32>,
    return
  }
  func.func @transform_0(%arg0: i32, %arg1: i32) -> (i32, i32, i32, i32) {
    %c0_i32 = arith.constant 0 : i32
    %c0_i32_0 = arith.constant 0 : i32
    %c0_i32_1 = arith.constant 0 : i32
    return %arg0, %arg1, %c0_i32, %c0_i32_0 : i32, i32, i32, i32
  }
  func.func @transform_1(%arg0: i32, %arg1: i32) -> (i32, i32, i32, i32) {
    %c8_i32 = arith.constant 8 : i32
    %0 = arith.muli %arg1, %c8_i32 : i32
    %c1_i32 = arith.constant 1 : i32
    %1 = arith.subi %0, %c1_i32 : i32
    %c1_i32_0 = arith.constant 1 : i32
    %2 = arith.maxsi %1, %c1_i32_0 : i32
    %c0_i32 = arith.constant 0 : i32
    %c0_i32_1 = arith.constant 0 : i32
    %c0_i32_2 = arith.constant 0 : i32
    return %arg0, %2, %c0_i32, %c0_i32_1 : i32, i32, i32, i32
  }
  func.func @transform_2(%arg0: i32, %arg1: i32) -> (i32, i32, i32, i32) {
    %c1_i32 = arith.constant 1 : i32
    %0 = arith.addi %arg1, %c1_i32 : i32
    %c8_i32 = arith.constant 8 : i32
    %1 = arith.muli %0, %c8_i32 : i32
    %c14_i32 = arith.constant 14 : i32
    %2 = arith.minsi %1, %c14_i32 : i32
    %c0_i32 = arith.constant 0 : i32
    %c0_i32_0 = arith.constant 0 : i32
    %c0_i32_1 = arith.constant 0 : i32
    return %arg0, %2, %c0_i32, %c0_i32_0 : i32, i32, i32, i32
  }
  func.func @transform_3(%arg0: i32, %arg1: i32) -> (i32, i32, i32) {
    %c0_i32 = arith.constant 0 : i32
    %c0_i32_0 = arith.constant 0 : i32
    %c0_i32_1 = arith.constant 0 : i32
    return %arg0, %c0_i32, %c0_i32_0 : i32, i32, i32
  }
  func.func @transform_4(%arg0: i32, %arg1: i32) -> (i32, i32, i32) {
    %c0_i32 = arith.constant 0 : i32
    %c0_i32_0 = arith.constant 0 : i32
    %c0_i32_1 = arith.constant 0 : i32
    return %arg0, %c0_i32, %c0_i32_0 : i32, i32, i32
  }
  func.func @transform_5(%arg0: i32, %arg1: i32) -> (i32, i32, i32) {
    %c0_i32 = arith.constant 0 : i32
    %c0_i32_0 = arith.constant 0 : i32
    %c0_i32_1 = arith.constant 0 : i32
    %c0_i32_2 = arith.constant 0 : i32
    return %c0_i32, %c0_i32_0, %c0_i32_1 : i32, i32, i32
  }
  func.func @transform_6(%arg0: i32, %arg1: i32) -> (i32, i32, i32, i32) {
    %c0_i32 = arith.constant 0 : i32
    %c0_i32_0 = arith.constant 0 : i32
    %c0_i32_1 = arith.constant 0 : i32
    return %arg0, %arg1, %c0_i32, %c0_i32_0 : i32, i32, i32, i32
  }
  func.func @transform_7(%arg0: i32, %arg1: i32) -> (i32, i32, i32, i32) {
    %c0_i32 = arith.constant 0 : i32
    %c0_i32_0 = arith.constant 0 : i32
    %c0_i32_1 = arith.constant 0 : i32
    return %arg0, %arg1, %c0_i32, %c0_i32_0 : i32, i32, i32, i32
  }
}

</mosaic_0001>

<bundles_post_ra>
// kernel: tpu_custom_call.1
= control target key start
LH: loop header
LB: loop body
LE: loop exit
PB: predicated region body
PF: predicated region fallthrough
CT: control target
= control target key end

     0   :  { %s4750_s0 = inlined_call_operand.hbm [shape: bf16[2,16,16,128], index: 0, kind: input, shape index: {}]   ;;  %s4751_s1 = inlined_call_operand.hbm [shape: bf16[2,16,16,128], index: 1, kind: input, shape index: {}]   ;;  %s4752_s2 = inlined_call_operand.hbm [shape: bf16[2,16,16,128], index: 2, kind: input, shape index: {}]   ;;  %s4753_s3 = inlined_call_operand.vmem [shape: f32[2,1,128], index: 3, kind: input, shape index: {}]   ;;  %s4754_s4 = inlined_call_operand.vmem [shape: f32[2,1,128], index: 4, kind: input, shape index: {}]   ;;  %s4755_s5 = inlined_call_operand.hbm [shape: bf16[3,384,128], index: 5, kind: input, shape index: {}]   ;;  %s4756_s6 = inlined_call_operand.hbm [shape: bf16[2,16,16,128], index: 6, kind: output, shape index: {0}]   ;;  %s4757_s7 = inlined_call_operand.hbm [shape: f32[2,2,2,128], index: 7, kind: output, shape index: {1}]  }
   0x1   :  { %4786 = sst [smem:[#allocation35_spill]] %s4750_s0 }
   0x2   :  { %4787 = sst [smem:[#allocation36_spill]] %s4751_s1 }
   0x3   :  { %4788 = sst [smem:[#allocation37_spill]] %s4752_s2 }
   0x4   :  { %4789 = sst [smem:[#allocation38_spill]] %s4755_s5 }
   0x5   :  { %4790 = sst [smem:[#allocation39_spill]] %s4756_s6 }
   0x6   :  { %4791 = sst [smem:[#allocation40_spill]] %s4757_s7 }
   0x7   :  { %13 = vsyncpa [#allocation3], 0 }
   0x8   :  { %15 = vsyncpa [#allocation3 + $0x1], 0 }
   0x9   :  { %16 = vsyncpa [#allocation6], 0 }
   0xa   :  { %18 = vsyncpa [#allocation6 + $0x1], 0 }
   0xb   :  { %19 = vsyncpa [#allocation9], 0 }
   0xc   :  { %20 = vsyncpa [#allocation4], 0 }
   0xd   :  { %22 = vsyncpa [#allocation4 + $0x1], 0 }
   0xe   :  { %23 = vsyncpa [#allocation12], 0 }
   0xf   :  { %25 = vsyncpa [#allocation12 + $0x1], 0  ;;  %s3826_s3 = smov 0   ;;  %s3828_s4 = smov 0  }
  0x10   :  { %s3830_s24 = smov 0   ;;  %s3832_s25 = smov 0  }
  0x11   :  { %s3834_s26 = smov 0   ;;  %s3836_s27 = smov 0  }
  0x12   :  { %s3838_s28 = smov 0   ;;  %s3840_s29 = smov 0  }
  0x13   :  { %s3842_s30 = smov 0   ;;  %s3844_s8 = smov 0  }
  0x14   :  { %s3846_s9 = smov 0   ;;  %s3848_s10 = smov 0  }
  0x15   :  { %s3850_s11 = smov 0   ;;  %s3852_s12 = smov 0  }
  0x16 LB: > { %4792 = sst [smem:[#allocation19_spill]] %s3722_s3  ;;  %s40_s13 = sadd.s32 1, %s3766_s10  ;;  %s3774_s12 = sphi %s3852_s12, %s31_s12   ;;  %s3770_s11 = sphi %s3850_s11, %s4866_s11   ;;  %s3766_s10 = sphi %s3848_s10, %s4865_s10   ;;  %s3762_s9 = sphi %s3846_s9, %s4864_s9   ;;  %s3758_s8 = sphi %s3844_s8, %s4863_s8   ;;  %s3754_s30 = sphi %s3842_s30, %s4862_s30   ;;  %s3750_s29 = sphi %s3840_s29, %s4871_s29   ;;  %s3746_s28 = sphi %s3838_s28, %s4870_s28   ;;  %s3742_s27 = sphi %s3836_s27, %s4860_s27   ;;  %s3738_s26 = sphi %s3834_s26, %s4869_s26   ;;  %s3734_s25 = sphi %s3832_s25, %s4868_s25   ;;  %s3730_s24 = sphi %s3830_s24, %s4867_s24   ;;  %s3726_s4 = sphi %s3828_s4, %s4858_s4   ;;  %s3722_s3 = sphi %s3826_s3, %s4857_s3  }
  0x17   : > { %4793 = sst [smem:[#allocation20_spill]] %s3726_s4  ;;  %s43_s14 = sadd.s32 1, %s3770_s11 }
  0x18   : > { %4794 = sst [smem:[#allocation21_spill]] %s3730_s24  ;;  %p41_p0 = scmp.ge.s32.totalorder %s40_s13, 2 }
  0x19   : > { %4795 = sst [smem:[#allocation22_spill]] %s3742_s27  ;;  %p4771_p1 = scmp.eq.s32.totalorder %s3774_s12, 0 }
  0x1a   : > { %4796 = sst [smem:[#allocation23_spill]] %s3754_s30  ;;  %s2545_s15 = sshll.u32 %s3766_s10, 3 }
  0x1b   : > { %4797 = sst [smem:[#allocation24_spill]] %s3758_s8  ;;  %s88_s16 = sadd.s32 1, %s3742_s27 }
  0x1c   : > { %4798 = sst [smem:[#allocation25_spill]] %s3762_s9  ;;  %s4873_s13 = smov (%p41_p0, %s40_s13), 0 }
  0x1d   : > { %4799 = sst [smem:[#allocation26_spill]] %s3766_s10  ;;  %s4875_s14 = smov (!%p41_p0, %s43_s14), %s3770_s11 }
  0x1e   : > { %4800 = sst [smem:[#allocation27_spill]] %s3770_s11  ;;  %s48_s17 = ssub.s32 %s3766_s10, %s4873_s13 }
  0x1f   : > { %4801 = sst [smem:[#allocation28_spill]] %s4873_s13  ;;  %s2546_s18 = sadd.s32 4294967295, %s2545_s15 }
  0x20   : > { %p45_p2 = scmp.ge.s32.totalorder %s4875_s14, 2  ;;  %p77_p3 = scmp.gt.s32.totalorder %s2546_s18, 1 }
  0x21   : > { %s2547_s19 = sshll.u32 %s4873_s13, 3  ;;  %p95_p4 = scmp.ne.s32.totalorder %s3742_s27, %s3738_s26 }
  0x22   : > { %s4877_s14 = smov (%p45_p2, %s4875_s14), 0  ;;  %s4879_s18 = smov (!%p77_p3, %s2546_s18), 1 }
  0x23   : > { %4802 = sst [smem:[#allocation29_spill]] %s4877_s14  ;;  %s3913_s20 = ssub.s32 %s3770_s11, %s4877_s14 }
  0x24   : > { %4803 = sst [smem:[#allocation30_spill]] %s3913_s20  ;;  %s2548_s21 = sadd.s32 4294967295, %s2547_s19 }
  0x25   : > { %s3916_s22 = sor.u32 %s48_s17, %s3913_s20  ;;  %p81_p5 = scmp.gt.s32.totalorder %s2548_s21, 1 }
  0x26   : > { %p3921_p7 = por %p95_p4, %p4771_p1  ;;  %p101_p8 = scmp.ne.s32.totalorder %s3738_s26, %s3734_s25 }
  0x27   : > { %s4881_s21 = smov (!%p81_p5, %s2548_s21), 1  ;;  %s3927_s14 = sadd.s32 8, %s2545_s15 }
  0x28   : > { %4805 = sst [smem:[#allocation31_spill]] %s3927_s14  ;;  %s84_s13 = ssub.s32 %s4879_s18, %s4881_s21 }
  0x29   : > { %s85_s7 = sor.u32 %s84_s13, %s3913_s20  ;;  %s3931_s17 = sadd.s32 8, %s2547_s19 }
  0x2a   : > { %p86_p10 = scmp.eq.s32.totalorder %s85_s7, 0  ;;  %p4770_p12 = scmp.lt.s32.totalorder %s3774_s12, 4 }
  0x2b   : > { %s3939_s9 = sshll.u32 %s3770_s11, 5  ;;  %s327_s8 = sand.u32 1, %s3774_s12  }
  0x2c   : > { %s3935_s6 = scalar_select %p86_p10, %s3742_s27, %s88_s16  }
  0x2d   : > { %s329_s15 = sand.u32 1, %s3742_s27   ;;  %s2562_s3 = sshll.u32 %s4879_s18, 1 }
  0x2e   : > { %4806 = sst [smem:[#allocation32_spill]] %s3935_s6  ;;  %s2559_s2 = sshll.u32 %s329_s15, 3 }
  0x2f   : > { %s341_s21 = sadd.s32 %s2562_s3, %s3939_s9  ;;  %s331_s13 = scalar_lea.vmem [#allocation5], %s2559_s2 }
  0x30   : > { %s2564_s4 = sshll.u32 %s341_s21, 6  ;;  %s344_s19 = sshll.u32 %s331_s13, 4  ;;  %s3949_s19 = int_to_ptr.vmem [resolvable:$true] %s344_s19 }
  0x31   : > { %s4807_s1 = sld [smem:[#allocation36_spill]]  ;;  %p3955_p13 = pnand %p4770_p12, %p3921_p7 }
  0x32   : > { %s3959_s2 = scalar_lea.sflag [#allocation6], %s327_s8 }
  0x33   : > { %p3468_p2 = pneg %p3955_p13 }
  0x37   : > { %s3947_s24 = scalar_lea.hbm %s4807_s1, %s2564_s4  ;;  %s3471_s16 = scalar_lea.hbm %s4807_s1, 4096 }
  0x38   : > { %s3466_s3 = scalar_lea.hbm %s3947_s24, 128  ;;  %p3472_p5 = scmp.lt.u32.totalorder %s3947_s24, %s4807_s1 }
  0x39   : > { %p3467_p0 = scmp.ne.s32.totalorder %s3947_s24, %s3466_s3  ;;  %p3473_p7 = scmp.lt.u32.totalorder %s3471_s16, %s3466_s3 }
  0x3a   : > { %p3475_p11 = scmp.lt.u32.totalorder %s3466_s3, %s3947_s24 }
  0x3b   : > { %p3469_p3 = pnand %p3468_p2, %p3467_p0  ;;  %p3474_p10 = por %p3473_p7, %p3472_p5 }
  0x3d   : > { %p3470_p4 = pneg %p3469_p3  ;;  %p3476_p9 = por %p3475_p11, %p3474_p10 }
  0x3f   : > { %p3477_p12 = pnand %p3476_p9, %p3470_p4 }
  0x41   : > { %3480 = shalt.err (!%p3477_p12)
}
  0x42   : > { %s3481_s8 = scalar_lea.vmem %s3949_s19, 128  ;;  %s3776_s23 = smov [#allocation5]  }
  0x43   : > { %p3482_p0 = scmp.ne.s32.totalorder %s3949_s19, %s3481_s8  ;;  %s3486_s15 = sshll.u32 %s3776_s23, 4  ;;  %s3487_s15 = int_to_ptr.vmem [resolvable:$false] %s3486_s15 }
  0x44   : > { %s3488_s21 = scalar_lea.vmem %s3487_s15, 256  ;;  %p3489_p6 = scmp.lt.s32.totalorder %s3949_s19, %s3487_s15 }
  0x45   : > { %p3484_p3 = pnand %p3482_p0, %p3468_p2  ;;  %p3490_p5 = scmp.lt.s32.totalorder %s3488_s21, %s3481_s8 }
  0x47   : > { %p3485_p1 = pneg %p3484_p3  ;;  %p3491_p7 = por %p3490_p5, %p3489_p6 }
  0x49   : > { %p3492_p11 = pnand %p3491_p7, %p3485_p1 }
  0x4b   : > { %3495 = shalt.err (!%p3492_p11)
}
  0x4c   : > { %s4772_s13 = smov 64   ;;  %s4774_s3 = smov 4  }
  0x4d   : > { %3232 = dma.hbm_to_vmem [thread:$0]  (!%p3955_p13), %s3947_s24, 128, %s3949_s19, %s3959_s2, %s4772_s13, %s4772_s13, %s4774_s3  }
  0x4e   : > { %s3991_s4 = sadd.s32 4294967295, %s3774_s12   ;;  %p2551_p1 = scmp.ge.s32.totalorder %s3774_s12, 1 }
  0x4f   : > { %p4776_p6 = scmp.eq.s32.totalorder %s3991_s4, 0  ;;  %p277_p12 = scmp.lt.s32.totalorder %s3774_s12, 5 }
  0x50   : > { %s3779_s24 = smov [#allocation8]   ;;  %s2544_s25 = sadd.s32 4294967294, %s3774_s12  }
  0x51   : > { %p4002_p2 = por %p101_p8, %p4776_p6  ;;  %p4006_p4 = pnand %p2551_p1, %p277_p12 }
  0x52   : > { %s289_s19 = sshll.u32 %s3779_s24, 4  ;;  %s52_s18 = sadd.s32 1, %s3754_s30  ;;  %s290_s19 = int_to_ptr.vmem [resolvable:$true] %s289_s19 }
  0x53   : > { %s4809_s14 = scalar_select %p4002_p2, 1, 0 }
  0x54   : > { %s4810_s7 = scalar_select %p4006_p4, 1, 0 }
  0x55   : > { %p3222_p13 = pneg %p4006_p4  ;;  %s4812_s5 = sld [smem:[#allocation38_spill]] }
  0x57   : > { %p4014_p10 = pnand %p3222_p13, %p4776_p6 }
  0x59   : > { %p3498_p0 = pneg %p4014_p10 }
  0x5b   : > { %s3496_s23 = scalar_lea.hbm %s4812_s5, 9216 }
  0x5c   : > { %p3497_p8 = scmp.ne.s32.totalorder %s4812_s5, %s3496_s23  ;;  %p3503_p7 = scmp.lt.u32.totalorder %s3496_s23, %s4812_s5 }
  0x5e   : > { %p3499_p3 = pnand %p3498_p0, %p3497_p8 }
  0x60   : > { %p3500_p5 = pneg %p3499_p3 }
  0x62   : > { %p3505_p11 = pnand %p3503_p7, %p3500_p5 }
  0x64   : > { %3508 = shalt.err (!%p3505_p11)
}
  0x65   : > { %s3509_s3 = scalar_lea.vmem %s290_s19, 9216  ;;  %p3517_p9 = scmp.lt.s32.totalorder %s290_s19, %s290_s19 }
  0x66   : > { %p3510_p1 = scmp.ne.s32.totalorder %s290_s19, %s3509_s3  ;;  %p3518_p6 = scmp.lt.s32.totalorder %s3509_s3, %s3509_s3 }
  0x68   : > { %p3512_p12 = pnand %p3510_p1, %p3498_p0  ;;  %p3519_p2 = por %p3518_p6, %p3517_p9 }
  0x6a   : > { %p3513_p13 = pneg %p3512_p12 }
  0x6c   : > { %p3520_p4 = pnand %p3519_p2, %p3513_p13 }
  0x6e   : > { %3523 = shalt.err (!%p3520_p4)
}
  0x6f   : > { %s4813_s20 = smov 4   ;;  %s4814_s8 = smov 64  }
  0x70   : > { %3225 = dma.hbm_to_vmem [thread:$0]  (!%p4014_p10), %s4812_s5, 9216, %s290_s19, [#allocation9], %s4814_s8, %s4814_s8, %s4813_s20  }
  0x71   : > { %p4815_p6 = scmp.eq.s32.totalorder %s3916_s22, 0  ;;  %p59_p9 = scmp.ne.s32.totalorder %s3754_s30, %s3750_s29 }
  0x72   : > { %p65_p2 = scmp.ne.s32.totalorder %s3750_s29, %s3746_s28  ;;  %p242_p4 = scmp.eq.s32.totalorder %s2544_s25, 3 }
  0x73   : > { %s4042_s13 = scalar_select %p4815_p6, %s3754_s30, %s52_s18  }
  0x74   : > { %s303_s3 = sand.u32 1, %s3754_s30   ;;  %p4817_p8 = scmp.eq.s32.totalorder %s3774_s12, 0 }
  0x75   : > { %4816 = sst [smem:[#allocation33_spill]] %s4042_s13  ;;  %p4818_p3 = scmp.eq.s32.totalorder %s3991_s4, 0 }
  0x76   : > { %p61_p0 = por %p4817_p8, %p59_p9  ;;  %p4820_p7 = scmp.eq.s32.totalorder %s3991_s4, 3 }
  0x77   : > { %p4053_p5 = por %p4818_p3, %p65_p2  ;;  %p4063_p10 = por %p242_p4, %p65_p2 }
  0x78   : > { %p4059_p11 = por %p4820_p7, %p59_p9  ;;  %s2554_s19 = sshll.u32 %s303_s3, 6 }
  0x79   : > { %s4822_s22 = scalar_select %p4063_p10, 1, 0 }
  0x7a   : > { %s4821_s23 = scalar_select %p4059_p11, 1, 0 }
  0x7b   : > { %4823 = sst [smem:[#allocation34_spill]] %s4822_s22  ;;  %s2709_s18 = sshll.u32 %s3766_s10, 4 }
  0x7c   : > { %s314_s25 = sadd.s32 %s2709_s18, %s3939_s9  ;;  %s307_s24 = scalar_lea.vmem [#allocation2], %s2554_s19 }
  0x7d   : > { %s317_s15 = sshll.u32 %s307_s24, 4  ;;  %s2558_s21 = sshll.u32 %s314_s25, 6  ;;  %s4069_s15 = int_to_ptr.vmem [resolvable:$true] %s317_s15 }
  0x7e   : > { %s4824_s0 = sld [smem:[#allocation35_spill]]  ;;  %p4825_p1 = scmp.lt.s32.totalorder %s3774_s12, 4 }
  0x7f   : > { %s4082_s19 = scalar_lea.sflag [#allocation3], %s303_s3 }
  0x80   : > { %p4078_p12 = pnand %p4825_p1, %p61_p0 }
  0x82   : > { %p3526_p6 = pneg %p4078_p12 }
  0x84   : > { %s4074_s11 = scalar_lea.hbm %s4824_s0, %s2558_s21  ;;  %s3529_s25 = scalar_lea.hbm %s4824_s0, 4096 }
  0x85   : > { %s3524_s18 = scalar_lea.hbm %s4074_s11, 1024  ;;  %p3530_p4 = scmp.lt.u32.totalorder %s4074_s11, %s4824_s0 }
  0x86   : > { %p3525_p13 = scmp.ne.s32.totalorder %s4074_s11, %s3524_s18  ;;  %p3531_p8 = scmp.lt.u32.totalorder %s3529_s25, %s3524_s18 }
  0x87   : > { %p3533_p3 = scmp.lt.u32.totalorder %s3524_s18, %s4074_s11 }
  0x88   : > { %p3527_p9 = pnand %p3526_p6, %p3525_p13  ;;  %p3532_p0 = por %p3531_p8, %p3530_p4 }
  0x8a   : > { %p3528_p2 = pneg %p3527_p9  ;;  %p3534_p7 = por %p3533_p3, %p3532_p0 }
  0x8c   : > { %p3535_p1 = pnand %p3534_p7, %p3528_p2 }
  0x8e   : > { %3538 = shalt.err (!%p3535_p1)
}
  0x8f   : > { %s3539_s3 = scalar_lea.vmem %s4069_s15, 1024  ;;  %s3780_s1 = smov [#allocation2]  }
  0x90   : > { %p3540_p13 = scmp.ne.s32.totalorder %s4069_s15, %s3539_s3  ;;  %s3544_s5 = sshll.u32 %s3780_s1, 4  ;;  %s3545_s5 = int_to_ptr.vmem [resolvable:$false] %s3544_s5 }
  0x91   : > { %s3546_s24 = scalar_lea.vmem %s3545_s5, 2048  ;;  %p3547_p11 = scmp.lt.s32.totalorder %s4069_s15, %s3545_s5 }
  0x92   : > { %p3542_p9 = pnand %p3540_p13, %p3526_p6  ;;  %p3548_p4 = scmp.lt.s32.totalorder %s3546_s24, %s3539_s3 }
  0x94   : > { %p3543_p10 = pneg %p3542_p9  ;;  %p3549_p8 = por %p3548_p4, %p3547_p11 }
  0x96   : > { %p3550_p0 = pnand %p3549_p8, %p3543_p10 }
  0x98   : > { %3553 = shalt.err (!%p3550_p0)
}
  0x99   : > { %s4827_s18 = sld [smem:[#allocation21_spill]]  ;;  %s4828_s25 = sld [smem:[#allocation31_spill]] }
  0x9a   : > { %s4829_s21 = sld [smem:[#allocation20_spill]]  ;;  %s4830_s1 = sld [smem:[#allocation19_spill]] }
  0x9b   : > { %s4831_s3 = sld [smem:[#allocation30_spill]]  ;;  %p4833_p10 = scmp.lt.s32.totalorder %s3931_s17, 14 }
  0x9c   : > { %3229 = dma.hbm_to_vmem [thread:$0]  (!%p4078_p12), %s4074_s11, 1024, %s4069_s15, %s4082_s19, %s4814_s8, %s4814_s8, %s4813_s20  }
  0x9d   : > { %s4885_s17 = smov (!%p4833_p10, %s3931_s17), 14  ;;  %p4834_p3 = scmp.eq.s32.totalorder %s3774_s12, 0 }
  0x9e   : > { %p4835_p13 = scmp.eq.s32.totalorder %s3991_s4, 0  ;;  %s4837_s27 = sld [smem:[#allocation37_spill]] }
  0x9f   : > { %s124_s13 = sadd.s32 1, %s4827_s18  ;;  %p4832_p11 = scmp.lt.s32.totalorder %s4828_s25, 14 }
  0xa0   : > { %p131_p6 = scmp.ne.s32.totalorder %s4827_s18, %s4829_s21  ;;  %p137_p2 = scmp.ne.s32.totalorder %s4829_s21, %s4830_s1 }
  0xa1   : > { %s4883_s25 = smov (!%p4832_p11, %s4828_s25), 14  ;;  %s356_s24 = sand.u32 1, %s4827_s18  }
  0xa2   : > { %s120_s5 = ssub.s32 %s4883_s25, %s4885_s17  ;;  %p133_p7 = por %p131_p6, %p4834_p3 }
  0xa3   : > { %s121_s0 = sor.u32 %s120_s5, %s4831_s3  ;;  %p4130_p9 = por %p137_p2, %p4835_p13 }
  0xa4   : > { %p122_p1 = scmp.eq.s32.totalorder %s121_s0, 0  ;;  %s2565_s11 = sshll.u32 %s356_s24, 3 }
  0xa5   : > { %s4836_s10 = scalar_select %p4130_p9, 1, 0 }
  0xa6   : > { %s2567_s15 = sshll.u32 %s4883_s25, 1  ;;  %s4887_s18 = smov (!%p122_p1, %s4827_s18), %s124_s13 }
  0xa7   : > { %s368_s19 = sadd.s32 %s2567_s15, %s3939_s9  ;;  %s358_s6 = scalar_lea.vmem [#allocation7], %s2565_s11 }
  0xa8   : > { %s2569_s30 = sshll.u32 %s368_s19, 6  ;;  %s371_s21 = sshll.u32 %s358_s6, 4  ;;  %s4143_s21 = int_to_ptr.vmem [resolvable:$true] %s371_s21 }
  0xa9   : > { %s4838_s22 = smov %s4837_s27  ;;  %s4141_s3 = scalar_lea.hbm %s4837_s27, %s2569_s30 }
  0xaa   : > { %p4839_p12 = scmp.lt.s32.totalorder %s3774_s12, 4  ;;  %s3554_s9 = scalar_lea.hbm %s4141_s3, 128 }
  0xab   : > { %p3555_p8 = scmp.ne.s32.totalorder %s4141_s3, %s3554_s9  ;;  %s3559_s30 = scalar_lea.hbm %s4838_s22, 4096 }
  0xac   : > { %p4147_p4 = pnand %p4839_p12, %p133_p7  ;;  %p3560_p6 = scmp.lt.u32.totalorder %s4141_s3, %s4838_s22 }
  0xad   : > { %p3561_p2 = scmp.lt.u32.totalorder %s3559_s30, %s3554_s9  ;;  %p3563_p7 = scmp.lt.u32.totalorder %s3554_s9, %s4141_s3 }
  0xae   : > { %p3556_p0 = pneg %p4147_p4 }
  0xaf   : > { %p3562_p3 = por %p3561_p2, %p3560_p6 }
  0xb0   : > { %p3557_p11 = pnand %p3556_p0, %p3555_p8 }
  0xb1   : > { %p3564_p1 = por %p3563_p7, %p3562_p3 }
  0xb2   : > { %p3558_p10 = pneg %p3557_p11 }
  0xb4   : > { %p3565_p13 = pnand %p3564_p1, %p3558_p10 }
  0xb6   : > { %3568 = shalt.err (!%p3565_p13)
}
  0xb7   : > { %s3569_s5 = scalar_lea.vmem %s4143_s21, 128  ;;  %s3781_s24 = smov [#allocation7]  }
  0xb8   : > { %p3570_p12 = scmp.ne.s32.totalorder %s4143_s21, %s3569_s5  ;;  %s3574_s11 = sshll.u32 %s3781_s24, 4  ;;  %s3575_s11 = int_to_ptr.vmem [resolvable:$false] %s3574_s11 }
  0xb9   : > { %s3576_s15 = scalar_lea.vmem %s3575_s11, 256  ;;  %p3577_p9 = scmp.lt.s32.totalorder %s4143_s21, %s3575_s11 }
  0xba   : > { %p3572_p8 = pnand %p3570_p12, %p3556_p0  ;;  %p3578_p6 = scmp.lt.s32.totalorder %s3576_s15, %s3569_s5 }
  0xbc   : > { %p3573_p11 = pneg %p3572_p8  ;;  %p3579_p2 = por %p3578_p6, %p3577_p9 }
  0xbe   : > { %p3580_p3 = pnand %p3579_p2, %p3573_p11 }
  0xc0   : > { %3583 = shalt.err (!%p3580_p3)
}
  0xc1   : > { %3235 = dma.hbm_to_vmem [thread:$0]  (!%p4147_p4), %s4141_s3, 128, %s4143_s21, %s3959_s2, %s4814_s8, %s4814_s8, %s4813_s20  }
  0xc2   : > { %p4841_p0 = scmp.ne.s32.totalorder %s4810_s7, 0 }
  0xc3   : > { %s4183_s19 = sand.u32 (!%p4841_p0), 1, %s3750_s29  }
  0xc4   : > { %395 = sbr.rel (%p4841_p0) target bundleno = 673 (0x2a1), region = 44  ;;  %s2571_s1 = sshll.u32 (!%p4841_p0), %s4183_s19, 6 }
  0xc5   : > { %s398_s17 = scalar_lea.sflag (!%p4841_p0), [#allocation3], %s4183_s19  ;;  %s4189_s0 = scalar_lea.vmem (!%p4841_p0), [#allocation2], %s2571_s1 }
  0xcb   : > { %3697 = dma.done.wait (%p4053_p5), %s398_s17, 1024  }
  0xcc   : > { %3699 = vsyncadd (%p4053_p5), %s398_s17, 4294966272  ;;  %s406_s2 = sand.u32 1, %s3991_s4   ;;  %s408_s7 = sand.u32 1, %s3738_s26  }
  0xcd   : > { %s4197_s20 = sshll.u32 %s408_s7, 3  ;;  %s407_s8 = scalar_lea.sflag [#allocation6], %s406_s2 }
  0xce   : > { %s410_s21 = scalar_lea.vmem [#allocation5], %s4197_s20  ;;  %p4842_p9 = scmp.ne.s32.totalorder %s4809_s14, 0 }
  0xd0   : > { %3701 = dma.done.wait (%p4842_p9), %s407_s8, 128  }
  0xd1   : > { %3703 = vsyncadd (%p4842_p9), %s407_s8, 4294967168  ;;  %s4843_s3 = sld [smem:[#allocation20_spill]]  ;;  %p4844_p5 = scmp.ne.s32.totalorder %s4836_s10, 0 }
  0xd7   : > { %s417_s9 = sand.u32 1, %s4843_s3  }
  0xd8   : > { %s4205_s16 = sshll.u32 %s417_s9, 3 }
  0xd9   : > { %s419_s6 = scalar_lea.vmem [#allocation7], %s4205_s16 }
  0xda   : > { %3705 = dma.done.wait (%p4844_p5), %s407_s8, 128  }
  0xdb   : > { %3707 = vsyncadd (%p4844_p5), %s407_s8, 4294967168  ;;  %p4845_p4 = scmp.eq.s32.totalorder %s3991_s4, 0 }
  0xdd   : > { %3709 = dma.done.wait (%p4845_p4), [#allocation9], 9216   ;;  %p4846_p10 = pmov %p4845_p4 }
  0xde   : > { %v3364_v0 = vld [vmem:[#allocation8 + $0x100] sm:$0xff]   ;;  %v3367_v3 = vld [vmem:[#allocation8 + $0x108] sm:$0xff]   ;;  %v3370_v6 = vld [vmem:[#allocation8 + $0x110] sm:$0xff]   ;;  %vm763_vm0 = vsmask.f32 256  ;;  %vm762_vm1 = vcmask 1040384  }
  0xdf   : > { %3711 = vsyncadd (%p4846_p10), [#allocation9], 4294958080  ;;  %v3365_v1 = vld [vmem:[#allocation8 + $0x140] sm:$0xff]   ;;  %2776 = vmatprep.subr.bf16.mxu0 %v3364_v0  ;;  %v3368_v4 = vld [vmem:[#allocation8 + $0x148] sm:$0xff]   ;;  %vm920_vm3 = vcmask 1046528   ;;  %s4602_s10 = scalar_lea.vmem [#allocation10], %s2571_s1 }
  0xe0   : > { %v3366_v2 = vld [vmem:[#allocation8 + $0xc0] sm:$0xff]   ;;  %3016 = vmatprep.subr.bf16.mxu1 %v3365_v1  ;;  %v3369_v5 = vld [vmem:[#allocation8 + $0xc8] sm:$0xff]   ;;  %v3371_v7 = vld [vmem:[#allocation8 + $0x150] sm:$0xff]   ;;  %vm807_vm4 = vsmask.f32 7424  ;;  %s4849_s4 = sld [smem:[#allocation24_spill]] }
  0xe1   : > { %2777 = vmatpush3.bf16.msra.mxu0 %v3366_v2  ;;  %3017 = vmatpush3.bf16.msra.mxu1 %v3365_v1  ;;  %v3372_v8 = vld [vmem:[#allocation8 + $0xd0] sm:$0xff]   ;;  %v3373_v9 = vld [vmem:[#allocation8 + $0x118] sm:$0xff]   ;;  %v3376_v12 = vld [vmem:[#allocation8 + $0x120] sm:$0xff]   ;;  %s4850_s14 = sld [smem:[#allocation25_spill]]  ;;  %s2327_s13 = sshll.u32 %s4602_s10, 4  ;;  %s4626_s13 = int_to_ptr.vmem [resolvable:$true] %s2327_s13 }
  0xe2   : > { %2778 = vmatprep.subr.bf16.mxu0 %v3367_v3  ;;  %3018 = vmatprep.subr.bf16.mxu1 %v3368_v4  ;;  %v3374_v10 = vld [vmem:[#allocation8 + $0x158] sm:$0xff]   ;;  %v3377_v13 = vld [vmem:[#allocation8 + $0x160] sm:$0xff]   ;;  %v3379_v15 = vld [vmem:[#allocation8 + $0x128] sm:$0xff]   ;;  %s4851_s15 = sld [smem:[#allocation39_spill]]  ;;  %s2306_s17 = scalar_lea.sflag [#allocation4], %s4183_s19 }
  0xe3   : > { %v3375_v11 = vld [vmem:[#allocation8 + $0xd8] sm:$0xff]   ;;  %v3378_v14 = vld [vmem:[#allocation8 + $0xe0] sm:$0xff]   ;;  %v3380_v16 = vld [vmem:[#allocation8 + $0x168] sm:$0xff]   ;;  %p4852_p1 = scmp.ne.s32.totalorder %s4821_s23, 0  ;;  %s3782_s2 = smov [#allocation10]  }
  0xe4   : > { %v3381_v17 = vld [vmem:[#allocation8 + $0xe8] sm:$0xff]   ;;  %v3382_v18 = vld [vmem:[#allocation8 + $0x130] sm:$0xff]   ;;  %v3385_v21 = vld [vmem:[#allocation8 + $0x138] sm:$0xff]   ;;  %s3588_s7 = sshll.u32 %s3782_s2, 4  ;;  %s3589_s7 = int_to_ptr.vmem [resolvable:$false] %s3588_s7 }
  0xe5   : > { %2779 = vmatpush3.bf16.msra.mxu0 %v3369_v5  ;;  %3019 = vmatpush3.bf16.msra.mxu1 %v3368_v4  ;;  %v3383_v19 = vld [vmem:[#allocation8 + $0x170] sm:$0xff]   ;;  %v3386_v22 = vld [vmem:[#allocation8 + $0x178] sm:$0xff]   ;;  %v494_v23 = vld [vmem:[%s4189_s0] sm:$0xf]  ;;  %s3590_s20 = scalar_lea.vmem %s3589_s7, 2048  ;;  %p3591_p8 = scmp.lt.s32.totalorder %s4626_s13, %s3589_s7 }
  0xe6   : > { %2780 = vmatprep.subr.bf16.mxu0 %v3370_v6  ;;  %3020 = vmatprep.subr.bf16.mxu1 %v3371_v7  ;;  %v3384_v20 = vld [vmem:[#allocation8 + $0xf0] sm:$0xff]   ;;  %v495_v24 = vld [vmem:[%s4189_s0 + $0x4] sm:$0xf]  ;;  %v496_v25 = vld [vmem:[%s4189_s0 + $0x8] sm:$0xf]  ;;  %v2578_v26 = vcombine.low %v494_v23, %v494_v23  ;;  %s2728_s27 = sshll.u32 %s4849_s4, 4 }
  0xe7   : > { %v2588_v27 = vcombine.low %v494_v23, %v495_v24  ;;  %v2598_v28 = vcombine.low %v495_v24, %v495_v24  ;;  %v497_v29 = vld [vmem:[%s4189_s0 + $0xc] sm:$0xf]  ;;  %v2579_v30 = vcombine.low %v496_v25, %v496_v25  ;;  %v3387_v33 = vld [vmem:[#allocation8 + $0xf8] sm:$0xff]   ;;  %v3394_v38 = vld [vmem:[#allocation8 + $0x40] sm:$0xff]   ;;  %s2699_s30 = sshll.u32 %s4850_s14, 5 }
  0xe8   : > { %v2589_v31 = vcombine.low %v496_v25, %v497_v29  ;;  %v2599_v32 = vcombine.low %v497_v29, %v497_v29  ;;  %v546_v34 = vshrl.u32 %v2578_v26, 16  ;;  %vm4222_vm2 = vmand %vm762_vm1, %vm763_vm0  ;;  %v3395_v43 = vld [vmem:[#allocation8 + $0x1c0] sm:$0xff]   ;;  %v498_v58 = vld [vmem:[%s4189_s0 + $0x10] sm:$0xf]  ;;  %s2324_s25 = sadd.s32 %s2728_s27, %s2699_s30 }
  0xe9   : > { %2781 = vmatpush3.bf16.msra.mxu0 %v3372_v8  ;;  %3021 = vmatpush3.bf16.msra.mxu1 %v3371_v7  ;;  %v620_v35 = vshrl.u32 %v2588_v27, 16  ;;  %v623_v36 = vshll.u32 %v2588_v27, 16  ;;  %v717_v37 = vshll.u32 %v2598_v28, 16  ;;  %v549_v46 = vshrl.u32 %v2579_v30, 16  ;;  %v3396_v63 = vld [vmem:[#allocation8] sm:$0xff]   ;;  %v3406_v25 = vld [vmem:[#allocation8 + $0x50] sm:$0xff]  }
  0xea   : > { %2782 = vmatprep.subr.bf16.mxu0 %v3373_v9  ;;  %3022 = vmatprep.subr.bf16.mxu1 %v3374_v10  ;;  %v627_v40 = vshrl.u32 %v2589_v31, 16  ;;  %v630_v41 = vshll.u32 %v2589_v31, 16  ;;  %v721_v42 = vshll.u32 %v2599_v32, 16  ;;  %v499_v0 = vld [vmem:[%s4189_s0 + $0x14] sm:$0xf]  ;;  %v3398_v9 = vld [vmem:[#allocation8 + $0x48] sm:$0xff]  }
  0xeb   : > { %v622_v44 = vrot.slane %v620_v35, 7  ;;  %v719_v45 = vrot.slane %v717_v37, 3  ;;  %v500_v5 = vld [vmem:[%s4189_s0 + $0x18] sm:$0xf]  ;;  %v501_v6 = vld [vmem:[%s4189_s0 + $0x1c] sm:$0xf] }
  0xec   : > { %v629_v47 = vrot.slane %v627_v40, 7  ;;  %v723_v48 = vrot.slane %v721_v42, 3  ;;  %v2591_v29 = vcombine.low %v500_v5, %v501_v6  ;;  %v3407_v30 = vld [vmem:[#allocation8 + $0x1c8] sm:$0xff]   ;;  %v3408_v35 = vld [vmem:[#allocation8 + $0x10] sm:$0xff]   ;;  %s2700_s5 = sshll.u32 %s2324_s25, 6 }
  0xed   : > { %2783 = vmatpush3.bf16.msra.mxu0 %v3375_v11  ;;  %3023 = vmatpush3.bf16.msra.mxu1 %v3374_v10  ;;  %v625_v49 = vor.u32 %v623_v36, %v622_v44  ;;  %v776_v50 = vsel %vm4222_vm2, %v622_v44, %v719_v45  ;;  %v502_v44 = vld [vmem:[%s4189_s0 + $0x20] sm:$0xf]  ;;  %v503_v45 = vld [vmem:[%s4189_s0 + $0x24] sm:$0xf]  ;;  %s4631_s1 = scalar_lea.hbm %s4851_s15, %s2700_s5 }
  0xee   : > { %2784 = vmatprep.subr.bf16.mxu0 %v3376_v12  ;;  %3024 = vmatprep.subr.bf16.mxu1 %v3377_v13  ;;  %v790_v51 = vsel %vm762_vm1, %v776_v50, 0  ;;  %v632_v52 = vor.u32 %v630_v41, %v629_v47  ;;  %v777_v53 = vsel %vm4222_vm2, %v629_v47, %v723_v48  ;;  %v641_v37 = vshrl.u32 %v2591_v29, 16  ;;  %v3410_v48 = vld [vmem:[#allocation8 + $0x58] sm:$0xff]  }
  0xef   : > { %v4233_v54 = vsel %vm4222_vm2, %v546_v34, %v625_v49  ;;  %v826_v55 = vshll.u32 %v790_v51, 16  ;;  %v925_v56 = vrot.slane %v790_v51, 1  ;;  %v792_v57 = vsel %vm762_vm1, %v777_v53, 0 }
  0xf0   : > { %v820_v59 = vshrl.u32 %v4233_v54, 16  ;;  %v822_v60 = vshll.u32 %v4233_v54, 16  ;;  %v924_v61 = vrot.slane %v4233_v54, 1  ;;  %v4242_v62 = vsel %vm4222_vm2, %v549_v46, %v632_v52 }
  0xf1   : > { %2785 = vmatpush3.bf16.msra.mxu0 %v3378_v14  ;;  %3025 = vmatpush3.bf16.msra.mxu1 %v3377_v13  ;;  %v828_v1 = vrot.slane %v826_v55, 1  ;;  %v927_v2 = vrot.slane %v4242_v62, 1  ;;  %v928_v3 = vrot.slane %v792_v57, 1  ;;  %v831_v4 = vshrl.u32 %v4242_v62, 16  ;;  %v3397_v13 = vld [vmem:[#allocation8 + $0x180] sm:$0xff]   ;;  %v3399_v14 = vld [vmem:[#allocation8 + $0x8] sm:$0xff]  }
  0xf2   : > { %2786 = vmatprep.subr.bf16.mxu0 %v3379_v15  ;;  %3026 = vmatprep.subr.bf16.mxu1 %v3380_v16  ;;  %v824_v7 = vrot.slane %v822_v60, 1  ;;  %v4250_v8 = vsel %vm920_vm3, %v924_v61, %v925_v56  ;;  %v833_v10 = vshll.u32 %v4242_v62, 16  ;;  %v837_v11 = vshll.u32 %v792_v57, 16  ;;  %v3411_v55 = vld [vmem:[#allocation8 + $0x18] sm:$0xff]   ;;  %v504_v57 = vld [vmem:[%s4189_s0 + $0x28] sm:$0xf] }
  0xf3   : > { %3032 = vmatprep.mubr.bf16.mxu1 %v4250_v8  ;;  %v4255_v12 = vsel %vm920_vm3, %v927_v2, %v928_v3  ;;  %v2580_v15 = vcombine.low %v498_v58, %v498_v58  ;;  %v2601_v34 = vcombine.low %v501_v6, %v501_v6  ;;  %v643_v47 = vrot.slane %v641_v37, 7  ;;  %v3421_v6 = vld [vmem:[#allocation8 + $0x190] sm:$0xff]  }
  0xf4   : > { %v2582_v49 = vcombine.low %v502_v44, %v502_v44  ;;  %v2592_v50 = vcombine.low %v502_v44, %v503_v45  ;;  %v506_v37 = vld [vmem:[%s4189_s0 + $0x30] sm:$0xf] }
  0xf5   : > { %2787 = vmatpush3.bf16.msra.mxu0 %v3381_v17  ;;  %3027 = vmatpush3.bf16.msra.mxu1 %v3380_v16  ;;  %v2590_v16 = vcombine.low %v498_v58, %v499_v0  ;;  %v2600_v17 = vcombine.low %v499_v0, %v499_v0  ;;  %v552_v28 = vshrl.u32 %v2580_v15, 16  ;;  %v729_v42 = vshll.u32 %v2601_v34, 16  ;;  %v505_v58 = vld [vmem:[%s4189_s0 + $0x2c] sm:$0xf] }
  0xf6   : > { %2788 = vmatprep.subr.bf16.mxu0 %v3382_v18  ;;  %3028 = vmatprep.subr.bf16.mxu1 %v3383_v19  ;;  %v825_v18 = vor.u32 %v824_v7, %v820_v59  ;;  %v3419_v59 = vld [vmem:[#allocation8 + $0x1d0] sm:$0xff]  }
  0xf7   : > { %v637_v23 = vshll.u32 %v2590_v16, 16  ;;  %v725_v24 = vshll.u32 %v2600_v17, 16  ;;  %v731_v53 = vrot.slane %v729_v42, 3 }
  0xf8   : > { %v4259_v26 = vsel %vm807_vm4, %v825_v18, %v828_v1  ;;  %v3418_v1 = vld [vmem:[#allocation8 + $0x60] sm:$0xff]   ;;  %v2602_v18 = vcombine.low %v503_v45, %v503_v45  ;;  %v3423_v45 = vld [vmem:[#allocation8 + $0x28] sm:$0xff]  }
  0xf9   : > { %2789 = vmatpush3.bf16.msra.mxu0 %v3384_v20  ;;  %3029 = vmatpush3.bf16.msra.mxu1 %v3383_v19  ;;  %v835_v19 = vrot.slane %v833_v10, 1  ;;  %v839_v20 = vrot.slane %v837_v11, 1  ;;  %v727_v32 = vrot.slane %v725_v24, 3  ;;  %v779_v2 = vsel %vm4222_vm2, %v643_v47, %v731_v53  ;;  %v3420_v24 = vld [vmem:[#allocation8 + $0x20] sm:$0xff]  }
  0xfa   : > { %2790 = vmatprep.subr.bf16.mxu0 %v3385_v21  ;;  %3030 = vmatprep.subr.bf16.mxu1 %v3386_v22  ;;  %v2581_v21 = vcombine.low %v500_v5, %v500_v5  ;;  %v648_v5 = vshrl.u32 %v2592_v50, 16  ;;  %v796_v10 = vsel %vm762_vm1, %v779_v2, 0 }
  0xfb   : > { %v836_v27 = vor.u32 %v835_v19, %v831_v4  ;;  %1244 = vmatprep.mubr.bf16.mxu0 %v4259_v26  ;;  %v558_v4 = vshrl.u32 %v2582_v49, 16  ;;  %v2583_v19 = vcombine.low %v504_v57, %v504_v57  ;;  %v859_v42 = vshll.u32 %v796_v10, 16  ;;  %v3430_v49 = vld [vmem:[#allocation8 + $0x70] sm:$0xff]  }
  0xfc   : > { %v650_v15 = vrot.slane %v648_v5, 7 }
  0xfd   : > { %2791 = vmatpush3.bf16.msra.mxu0 %v3387_v33  ;;  %3031 = vmatpush3.bf16.msra.mxu1 %v3386_v22  ;;  %v634_v22 = vshrl.u32 %v2590_v16, 16  ;;  %v555_v33 = vshrl.u32 %v2581_v21, 16  ;;  %v4264_v36 = vsel %vm807_vm4, %v836_v27, %v839_v20  ;;  %v651_v16 = vshll.u32 %v2592_v50, 16 }
  0xfe   : > { %2856 = vmatprep.subr.bf16.mxu1 %v3394_v38  ;;  %2936 = vmatprep.subr.bf16.mxu0 %v3395_v43  ;;  %v644_v38 = vshll.u32 %v2591_v29, 16  ;;  %v3409_v43 = vld [vmem:[#allocation8 + $0x188] sm:$0xff]   ;;  %v2593_v20 = vcombine.low %v504_v57, %v505_v58  ;;  %v561_v29 = vshrl.u32 %v2583_v19, 16  ;;  %v861_v53 = vrot.slane %v859_v42, 1  ;;  %v509_v57 = vld [vmem:[%s4189_s0 + $0x3c] sm:$0xf] }
  0xff   : > { %v636_v31 = vrot.slane %v634_v22, 7  ;;  %v653_v22 = vor.u32 %v651_v16, %v650_v15  ;;  %v493_v42 = vld [vmem:[%s410_s21 + $0x4] sm:$0xf] }
 0x100   : > { %3033 = vmatmul.mubr.bf16.vlgmr.msra.gmra.mrb[0].mxu1 %v4255_v12  ;;  %1245 = vmatmul.mubr.bf16.vlgmr.msra.gmra.mrb[0].mxu0 %v4233_v54  ;;  %v646_v61 = vor.u32 %v644_v38, %v643_v47  ;;  %v2584_v47 = vcombine.low %v506_v37, %v506_v37 }
 0x101   : > { %2857 = vmatpush3.bf16.msra.mxu1 %v3396_v63  ;;  %2937 = vmatpush3.bf16.msra.mxu0 %v3397_v13  ;;  %v639_v40 = vor.u32 %v637_v23, %v636_v31  ;;  %v778_v41 = vsel %vm4222_vm2, %v636_v31, %v727_v32  ;;  %v2603_v23 = vcombine.low %v505_v58, %v505_v58  ;;  %v3422_v31 = vld [vmem:[#allocation8 + $0x68] sm:$0xff]   ;;  %v3431_v58 = vld [vmem:[#allocation8 + $0x1d8] sm:$0xff]  }
 0x102   : > { %2858 = vmatprep.subr.bf16.mxu1 %v3398_v9  ;;  %1252 = vmatprep.mubr.bf16.mxu0 %v4264_v36  ;;  %v794_v46 = vsel %vm762_vm1, %v778_v41, 0  ;;  %v4288_v9 = vsel %vm4222_vm2, %v555_v33, %v646_v61  ;;  %v4305_v32 = vsel %vm4222_vm2, %v558_v4, %v653_v22  ;;  %v658_v33 = vshll.u32 %v2593_v20, 16  ;;  %v3432_v4 = vld [vmem:[#allocation8 + $0x30] sm:$0xff]   ;;  %v3434_v22 = vld [vmem:[#allocation8 + $0x78] sm:$0xff]  }
 0x103   : > { %v4274_v51 = vsel %vm4222_vm2, %v552_v28, %v639_v40  ;;  %v931_v52 = vrot.slane %v794_v46, 1  ;;  %2938 = vmatprep.subr.bf16.mxu0 %v3407_v30  ;;  %v848_v56 = vshll.u32 %v794_v46, 16  ;;  %v933_v13 = vrot.slane %v4288_v9, 1 }
 0x104   : > { %v930_v60 = vrot.slane %v4274_v51, 1  ;;  %v842_v63 = vshrl.u32 %v4274_v51, 16  ;;  %v844_v0 = vshll.u32 %v4274_v51, 16  ;;  %v733_v28 = vshll.u32 %v2602_v18, 16 }
 0x105   : > { %2859 = vmatpush3.bf16.msra.mxu1 %v3399_v14  ;;  %2939 = vmatpush3.bf16.msra.mxu0 %v3409_v43  ;;  %v850_v3 = vrot.slane %v848_v56, 1  ;;  %v934_v14 = vrot.slane %v796_v10, 1  ;;  %v655_v30 = vshrl.u32 %v2593_v20, 16  ;;  %v737_v34 = vshll.u32 %v2603_v23, 16  ;;  %v507_v43 = vld [vmem:[%s4189_s0 + $0x34] sm:$0xf] }
 0x106   : > { %2860 = vmatprep.subr.bf16.mxu1 %v3406_v25  ;;  %v4284_v7 = vsel %vm920_vm3, %v930_v60, %v931_v52  ;;  %v846_v11 = vrot.slane %v844_v0, 1  ;;  %2940 = vmatprep.subr.bf16.mxu0 %v3419_v59  ;;  %v853_v25 = vshrl.u32 %v4288_v9, 16  ;;  %v735_v38 = vrot.slane %v733_v28, 3  ;;  %v508_v56 = vld [vmem:[%s4189_s0 + $0x38] sm:$0xf]  ;;  %s3584_s0 = scalar_lea.vmem %s4626_s13, 1024 }
 0x107   : > { %3036 = vmatprep.mubr.bf16.mxu1 %v4284_v7  ;;  %v4295_v21 = vsel %vm920_vm3, %v933_v13, %v934_v14  ;;  %v936_v40 = vrot.slane %v4305_v32, 1  ;;  %v657_v41 = vrot.slane %v655_v30, 7  ;;  %v739_v44 = vrot.slane %v737_v34, 3  ;;  %v3433_v13 = vld [vmem:[#allocation8 + $0x198] sm:$0xff]   ;;  %p3585_p7 = scmp.ne.s32.totalorder %s4626_s13, %s3584_s0  ;;  %p3592_p11 = scmp.lt.s32.totalorder %s3590_s20, %s3584_s0 }
 0x108   : > { %1253 = vmatmul.mubr.bf16.gmra.mrb[4].mxu0 %v4242_v62  ;;  %v847_v17 = vor.u32 %v846_v11, %v842_v63  ;;  %3037 = vmatmul.mubr.bf16.gmra.mrb[4].mxu1 %v4295_v21  ;;  %v780_v50 = vsel %vm4222_vm2, %v650_v15, %v735_v38  ;;  %v564_v63 = vshrl.u32 %v2584_v47, 16  ;;  %v2595_v19 = vcombine.low %v508_v56, %v509_v57 }
 0x109   : > { %2861 = vmatpush3.bf16.msra.mxu1 %v3408_v35  ;;  %2941 = vmatpush3.bf16.msra.mxu0 %v3421_v6  ;;  %v855_v35 = vshll.u32 %v4288_v9, 16  ;;  %v660_v52 = vor.u32 %v658_v33, %v657_v41  ;;  %v798_v59 = vsel %vm762_vm1, %v780_v50, 0  ;;  %v781_v60 = vsel %vm4222_vm2, %v657_v41, %v739_v44  ;;  %v3435_v33 = vld [vmem:[#allocation8 + $0x38] sm:$0xff]   ;;  %v492_v41 = vld [vmem:[%s410_s21] sm:$0xf]  ;;  %p3586_p13 = pnand %p3585_p7, %p4852_p1  ;;  %p3593_p6 = por %p3592_p11, %p3591_p8 }
 0x10a   : > { %2862 = vmatprep.subr.bf16.mxu1 %v3410_v48  ;;  %v4300_v27 = vsel %vm807_vm4, %v847_v17, %v850_v3  ;;  %v2594_v48 = vcombine.low %v506_v37, %v507_v43  ;;  %v937_v0 = vrot.slane %v798_v59, 1  ;;  %v4324_v2 = vsel %vm762_vm1, %v781_v60, 0  ;;  %2942 = vmatprep.subr.bf16.mxu0 %v3431_v58 }
 0x10b   : > { %1260 = vmatprep.mubr.bf16.mxu0 %v4300_v27  ;;  %v857_v46 = vrot.slane %v855_v35, 1  ;;  %v940_v6 = vrot.slane %v4324_v2, 1  ;;  %v2585_v17 = vcombine.low %v508_v56, %v508_v56  ;;  %v2605_v20 = vcombine.low %v509_v57, %v509_v57  ;;  %v3439_v35 = vld [vmem:[#allocation8 + $0x1e0] sm:$0xff]   ;;  %p3587_p12 = pneg %p3586_p13 }
 0x10c   : > { %v662_v3 = vshrl.u32 %v2594_v48, 16  ;;  %v665_v11 = vshll.u32 %v2594_v48, 16  ;;  %v4332_v14 = vsel %vm920_vm3, %v936_v40, %v937_v0  ;;  %v864_v23 = vshrl.u32 %v4305_v32, 16 }
 0x10d   : > { %2863 = vmatpush3.bf16.msra.mxu1 %v3411_v55  ;;  %v2604_v55 = vcombine.low %v507_v43, %v507_v43  ;;  %v858_v61 = vor.u32 %v857_v46, %v853_v25  ;;  %3040 = vmatprep.mubr.bf16.mxu1 %v4332_v14  ;;  %v567_v28 = vshrl.u32 %v2585_v17, 16  ;;  %v672_v30 = vshll.u32 %v2595_v19, 16  ;;  %v3440_v43 = vld [vmem:[#allocation8 + $0x1a0] sm:$0xff]   ;;  %p3594_p2 = pnand %p3593_p6, %p3587_p12 }
 0x10e   : > { %2864 = vmatprep.subr.bf16.mxu1 %v3418_v1  ;;  %v4321_v1 = vsel %vm4222_vm2, %v561_v29, %v660_v52  ;;  %v664_v15 = vrot.slane %v662_v3, 7  ;;  %2943 = vmatpush3.bf16.msra.mxu0 %v3433_v13  ;;  %v669_v29 = vshrl.u32 %v2595_v19, 16  ;;  %v866_v34 = vshll.u32 %v4305_v32, 16  ;;  %v3443_v17 = vld [vmem:[#allocation8 + $0x80] sm:$0xff]  }
 0x10f   : > { %v939_v5 = vrot.slane %v4321_v1, 1  ;;  %v4329_v10 = vsel %vm807_vm4, %v858_v61, %v861_v53  ;;  %v741_v16 = vshll.u32 %v2604_v55, 16  ;;  %v870_v40 = vshll.u32 %v798_v59, 16  ;;  %2944 = vmatprep.subr.bf16.mxu0 %v3439_v35  ;;  %v3441_v53 = vld [vmem:[#allocation8 + $0x1e8] sm:$0xff]  }
 0x110   : > { %1261 = vmatmul.mubr.bf16.gmra.mrb[8].mxu0 %v4274_v51  ;;  %v671_v46 = vrot.slane %v669_v29, 7  ;;  %v2577_v52 = vcombine.low %v492_v41, %v492_v41  ;;  %v2587_v57 = vcombine.low %v492_v41, %v493_v42  ;;  %v2597_v58 = vcombine.low %v493_v42, %v493_v42 }
 0x111   : > { %2865 = vmatpush3.bf16.msra.mxu1 %v3420_v24  ;;  %1268 = vmatprep.mubr.bf16.mxu0 %v4329_v10  ;;  %v4337_v18 = vsel %vm920_vm3, %v939_v5, %v940_v6  ;;  %v667_v24 = vor.u32 %v665_v11, %v664_v15  ;;  %v743_v25 = vrot.slane %v741_v16, 3  ;;  %v872_v50 = vrot.slane %v870_v40, 1  ;;  %v3442_v6 = vld [vmem:[#allocation8 + $0x1a8] sm:$0xff]   ;;  %v3445_v40 = vld [vmem:[#allocation8 + $0x1b0] sm:$0xff]  }
 0x112   : > { %2866 = vmatprep.subr.bf16.mxu1 %v3422_v31  ;;  %3041 = vmatmul.mubr.bf16.gmra.mrb[8].mxu1 %v4337_v18  ;;  %v745_v31 = vshll.u32 %v2605_v20, 16  ;;  %v674_v55 = vor.u32 %v672_v30, %v671_v46  ;;  %v616_v5 = vshll.u32 %v2587_v57, 16  ;;  %v875_v16 = vshrl.u32 %v4321_v1, 16  ;;  %v3444_v30 = vld [vmem:[#allocation8 + $0x1f0] sm:$0xff]  }
 0x113   : > { %v4344_v37 = vsel %vm4222_vm2, %v564_v63, %v667_v24  ;;  %v782_v38 = vsel %vm4222_vm2, %v664_v15, %v743_v25  ;;  %v543_v63 = vshrl.u32 %v2577_v52, 16  ;;  %2945 = vmatpush3.bf16.msra.mxu0 %v3440_v43  ;;  %v713_v15 = vshll.u32 %v2597_v58, 16  ;;  %v3448_v52 = vld [vmem:[#allocation8 + $0x1b8] sm:$0xff]  }
 0x114   : > { %v802_v44 = vsel %vm762_vm1, %v782_v38, 0  ;;  %v747_v47 = vrot.slane %v745_v31, 3  ;;  %v4366_v0 = vsel %vm4222_vm2, %v567_v28, %v674_v55  ;;  %2946 = vmatprep.subr.bf16.mxu0 %v3441_v53  ;;  %v877_v20 = vshll.u32 %v4321_v1, 16 }
 0x115   : > { %2867 = vmatpush3.bf16.msra.mxu1 %v3423_v45  ;;  %v942_v45 = vrot.slane %v4344_v37, 1  ;;  %v943_v48 = vrot.slane %v802_v44, 1  ;;  %v1015_v11 = vrot.slane %v4366_v0, 1  ;;  %v715_v25 = vrot.slane %v713_v15, 3 }
 0x116   : > { %2868 = vmatprep.subr.bf16.mxu1 %v3430_v49  ;;  %v868_v49 = vrot.slane %v866_v34, 1  ;;  %v783_v56 = vsel %vm4222_vm2, %v671_v46, %v747_v47  ;;  %v888_v28 = vshll.u32 %v4344_v37, 16  ;;  %v892_v29 = vshll.u32 %v802_v44, 16 }
 0x117   : > { %v4358_v59 = vsel %vm920_vm3, %v942_v45, %v943_v48  ;;  %v4361_v60 = vsel %vm762_vm1, %v783_v56, 0  ;;  %2947 = vmatpush3.bf16.msra.mxu0 %v3442_v6  ;;  %v1004_v44 = vshll.u32 %v4366_v0, 16  ;;  %v1002_v56 = vshrl.u32 %v4366_v0, 16 }
 0x118   : > { %1269 = vmatmul.mubr.bf16.gmra.mrb[12].mxu0 %v4288_v9  ;;  %v869_v61 = vor.u32 %v868_v49, %v864_v23  ;;  %3044 = vmatprep.mubr.bf16.mxu1 %v4358_v59  ;;  %v1016_v3 = vrot.slane %v4361_v60, 1  ;;  %v886_v23 = vshrl.u32 %v4344_v37, 16  ;;  %v890_v35 = vrot.slane %v888_v28, 1 }
 0x119   : > { %2869 = vmatpush3.bf16.msra.mxu1 %v3432_v4  ;;  %v613_v4 = vshrl.u32 %v2587_v57, 16  ;;  %v894_v38 = vrot.slane %v892_v29, 1  ;;  %2948 = vmatprep.subr.bf16.mxu0 %v3444_v30  ;;  %v1006_v57 = vrot.slane %v1004_v44, 1  ;;  %v3465_v30 = vld [vmem:[#allocation8 + $0x238] sm:$0xff]  }
 0x11a   : > { %2870 = vmatprep.subr.bf16.mxu1 %v3434_v22  ;;  %v4371_v13 = vsel %vm807_vm4, %v869_v61, %v872_v50  ;;  %v881_v22 = vshll.u32 %v4324_v2, 16  ;;  %v4379_v24 = vsel %vm920_vm3, %v1015_v11, %v1016_v3  ;;  %v891_v48 = vor.u32 %v890_v35, %v886_v23  ;;  %v3447_v50 = vld [vmem:[#allocation8 + $0x1f8] sm:$0xff]   ;;  %v4406_v3 = vld [vmem:[#allocation8 + $0x200] sm:$0xff]  }
 0x11b   : > { %1276 = vmatprep.mubr.bf16.mxu0 %v4371_v13  ;;  %v615_v19 = vrot.slane %v613_v4, 7  ;;  %3045 = vmatmul.mubr.bf16.gmra.mrb[12].mxu1 %v4379_v24  ;;  %v1007_v6 = vor.u32 %v1006_v57, %v1002_v56  ;;  %v511_v23 = vld [vmem:[%s419_s6 + $0x4] sm:$0xf] }
 0x11c   : > { %v883_v34 = vrot.slane %v881_v22, 1  ;;  %2949 = vmatpush3.bf16.msra.mxu0 %v3445_v40  ;;  %v4403_v61 = vsel %vm807_vm4, %v891_v48, %v894_v38  ;;  %v510_v22 = vld [vmem:[%s419_s6] sm:$0xf]  ;;  %v2606_v29 = vcombine.low %v511_v23, %v511_v23 }
 0x11d   : > { %2871 = vmatpush3.bf16.msra.mxu1 %v3435_v33  ;;  %v618_v31 = vor.u32 %v616_v5, %v615_v19  ;;  %v879_v33 = vrot.slane %v877_v20, 1  ;;  %v775_v2 = vsel %vm4222_vm2, %v615_v19, %v715_v25  ;;  %2950 = vmatprep.subr.bf16.mxu0 %v3447_v50  ;;  %v3446_v5 = vld [vmem:[#allocation8 + $0x88] sm:$0xff]   ;;  %v3456_v19 = vld [vmem:[#allocation8 + $0xb0] sm:$0xff]   ;;  %v3458_v20 = vld [vmem:[#allocation8 + $0xb8] sm:$0xff]  }
 0x11e   : > { %3048 = vmatprep.subr.bf16.mxu1 %v3443_v17  ;;  %v4391_v42 = vsel %vm762_vm1, %v775_v2, 0  ;;  %v4461_v25 = vld [vmem:[#allocation8 + $0x230] sm:$0xff]  }
 0x11f   : > { %v4388_v41 = vsel %vm4222_vm2, %v543_v63, %v618_v31  ;;  %v880_v43 = vor.u32 %v879_v33, %v875_v16  ;;  %v815_v47 = vshll.u32 %v4391_v42, 16  ;;  %v1008_v63 = vshll.u32 %v4361_v60, 16  ;;  %v3449_v60 = vld [vmem:[#allocation8 + $0x90] sm:$0xff]   ;;  %v3451_v16 = vld [vmem:[#allocation8 + $0x98] sm:$0xff]  }
 0x120   : > { %1277 = vmatmul.mubr.bf16.gmra.mrb[16].mxu0 %v4305_v32  ;;  %v809_v45 = vshrl.u32 %v4388_v41, 16  ;;  %v811_v46 = vshll.u32 %v4388_v41, 16  ;;  %v749_v33 = vshll.u32 %v2606_v29, 16  ;;  %v921_v35 = vrot.slane %v4388_v41, 1 }
 0x121   : > { %v4398_v49 = vsel %vm807_vm4, %v880_v43, %v883_v34  ;;  %v817_v55 = vrot.slane %v815_v47, 1  ;;  %2951 = vmatpush3.bf16.msra.mxu0 %v3448_v52  ;;  %v1010_v11 = vrot.slane %v1008_v63, 1  ;;  %v922_v38 = vrot.slane %v4391_v42, 1 }
 0x122   : > { %v813_v53 = vrot.slane %v811_v46, 1  ;;  %1284 = vmatprep.mubr.bf16.mxu0 %v4398_v49  ;;  %3080 = vmatprep.subr.bf16.mxu0 %v4406_v3  ;;  %v751_v40 = vrot.slane %v749_v33, 3 }
 0x123   : > { %v4415_v15 = vsel %vm807_vm4, %v1007_v6, %v1010_v11  ;;  %v923_v43 = vsel %vm920_vm3, %v921_v35, %v922_v38 }
 0x124   : > { %v814_v58 = vor.u32 %v813_v53, %v809_v45 }
 0x126   : > { %v818_v4 = vsel %vm807_vm4, %v814_v58, %v817_v55 }
 0x127   : > { %1582 = vmatprep.mubr.bf16.mxu1 %v818_v4 }
 0x128   : > { %1285 = vmatmul.mubr.bf16.gmra.mrb[20].mxu0 %v4321_v1  ;;  %1583 = vmatmul.mubr.bf16.vlgmr.msra.gmra.mrb[16].mxu1 %v4388_v41 }
 0x129   : > { %1292 = vmatprep.mubr.bf16.mxu0 %v4403_v61  ;;  %1590 = vmatprep.mubr.bf16.mxu1 %v4259_v26  ;;  %v3453_v26 = vld [vmem:[#allocation8 + $0xa0] sm:$0xff]  }
 0x12a   : > { %3049 = vmatpush3.bf16.msra.mxu1 %v3443_v17  ;;  %v3455_v17 = vld [vmem:[#allocation8 + $0xa8] sm:$0xff]  }
 0x12b   : > { %3050 = vmatprep.subr.bf16.mxu1 %v3446_v5 }
 0x12e   : > { %3051 = vmatpush3.bf16.msra.mxu1 %v3446_v5 }
 0x12f   : > { %3052 = vmatprep.subr.bf16.mxu1 %v3449_v60 }
 0x130   : > { %1293 = vmatmul.mubr.bf16.gmra.mrb[24].mxu0 %v4344_v37  ;;  %1591 = vmatmul.mubr.bf16.gmra.mrb[20].mxu1 %v4233_v54  ;;  %v4425_v54 = vld [vmem:[#allocation8 + $0x208] sm:$0xff]  }
 0x131   : > { %1300 = vmatprep.mubr.bf16.mxu0 %v4415_v15  ;;  %1598 = vmatprep.mubr.bf16.mxu1 %v4264_v36 }
 0x132   : > { %3053 = vmatpush3.bf16.msra.mxu1 %v3449_v60 }
 0x133   : > { %3054 = vmatprep.subr.bf16.mxu1 %v3451_v16 }
 0x136   : > { %3055 = vmatpush3.bf16.msra.mxu1 %v3451_v16 }
 0x137   : > { %3056 = vmatprep.subr.bf16.mxu1 %v3453_v26 }
 0x138   : > { %1301 = vmatmul.mubr.bf16.gmra.mrb[28].mxu0 %v4366_v0  ;;  %1599 = vmatmul.mubr.bf16.gmra.mrb[24].mxu1 %v4242_v62 }
 0x139   : > { %1987 = vmatprep.mubr.bf16.mxu0 %v4264_v36  ;;  %1606 = vmatprep.mubr.bf16.mxu1 %v4300_v27  ;;  %v4432_v36 = vld [vmem:[#allocation8 + $0x210] sm:$0xff]  }
 0x13a   : > { %3057 = vmatpush3.bf16.msra.mxu1 %v3453_v26 }
 0x13b   : > { %3058 = vmatprep.subr.bf16.mxu1 %v3455_v17 }
 0x13e   : > { %3059 = vmatpush3.bf16.msra.mxu1 %v3455_v17 }
 0x13f   : > { %3060 = vmatprep.subr.bf16.mxu1 %v3456_v19 }
 0x140   : > { %1988 = vmatmul.mubr.bf16.vlgmr.msra.gmra.mrb[32].mxu0 %v4242_v62  ;;  %1607 = vmatmul.mubr.bf16.gmra.mrb[28].mxu1 %v4274_v51  ;;  %v4437_v62 = vld [vmem:[#allocation8 + $0x218] sm:$0xff]  }
 0x141   : > { %3081 = vmatpush3.bf16.msra.mxu0 %v4406_v3  ;;  %1995 = vmatprep.mubr.bf16.mxu0 %v4300_v27  ;;  %v4445_v27 = vld [vmem:[#allocation8 + $0x220] sm:$0xff]  }
 0x142   : > { %3082 = vmatprep.subr.bf16.mxu0 %v4425_v54  ;;  %1614 = vmatprep.mubr.bf16.mxu1 %v4329_v10 }
 0x143   : > { %3061 = vmatpush3.bf16.msra.mxu1 %v3456_v19 }
 0x144   : > { %3062 = vmatprep.subr.bf16.mxu1 %v3458_v20 }
 0x145   : > { %3083 = vmatpush3.bf16.msra.mxu0 %v4425_v54 }
 0x146   : > { %3084 = vmatprep.subr.bf16.mxu0 %v4432_v36 }
 0x147   : > { %3063 = vmatpush3.bf16.msra.mxu1 %v3458_v20 }
 0x148   : > { %1996 = vmatmul.mubr.bf16.gmra.mrb[36].mxu0 %v4274_v51  ;;  %3112 = vmatprep.subr.bf16.mxu1 %v4406_v3  ;;  %v4454_v51 = vld [vmem:[#allocation8 + $0x228] sm:$0xff]  }
 0x149   : > { %2003 = vmatprep.mubr.bf16.mxu0 %v4329_v10  ;;  %3085 = vmatpush3.bf16.msra.mxu0 %v4432_v36  ;;  %v2596_v10 = vcombine.low %v510_v22, %v511_v23 }
 0x14a   : > { %1615 = vmatmul.mubr.bf16.gmra.mrb[32].mxu1 %v4288_v9  ;;  %3086 = vmatprep.subr.bf16.mxu0 %v4437_v62 }
 0x14b   : > { %1622 = vmatprep.mubr.bf16.mxu1 %v4371_v13  ;;  %v676_v28 = vshrl.u32 %v2596_v10, 16 }
 0x14d   : > { %3087 = vmatpush3.bf16.msra.mxu0 %v4437_v62  ;;  %v678_v31 = vrot.slane %v676_v28, 7 }
 0x14e   : > { %3088 = vmatprep.subr.bf16.mxu0 %v4445_v27 }
 0x14f   : > { %v784_v44 = vsel %vm4222_vm2, %v678_v31, %v751_v40 }
 0x150   : > { %2004 = vmatmul.mubr.bf16.gmra.mrb[40].mxu0 %v4288_v9  ;;  %v2586_v9 = vcombine.low %v510_v22, %v510_v22  ;;  %v806_v41 = vsel %vm762_vm1, %v784_v44, 0 }
 0x151   : > { %2011 = vmatprep.mubr.bf16.mxu0 %v4371_v13  ;;  %3089 = vmatpush3.bf16.msra.mxu0 %v4445_v27  ;;  %v679_v13 = vshll.u32 %v2596_v10, 16  ;;  %v1751_v47 = vshll.u32 %v806_v41, 16 }
 0x152   : > { %1623 = vmatmul.mubr.bf16.gmra.mrb[36].mxu1 %v4305_v32  ;;  %3090 = vmatprep.subr.bf16.mxu0 %v4454_v51  ;;  %v570_v34 = vshrl.u32 %v2586_v9, 16 }
 0x153   : > { %1630 = vmatprep.mubr.bf16.mxu1 %v4398_v49  ;;  %v681_v2 = vor.u32 %v679_v13, %v678_v31  ;;  %v1753_v39 = vrot.slane %v1751_v47, 1 }
 0x155   : > { %3091 = vmatpush3.bf16.msra.mxu0 %v4454_v51 }
 0x156   : > { %3092 = vmatprep.subr.bf16.mxu0 %v4461_v25 }
 0x158   : > { %2012 = vmatmul.mubr.bf16.gmra.mrb[44].mxu0 %v4305_v32  ;;  %v774_v32 = vsel %vm4222_vm2, %v570_v34, %v681_v2 }
 0x159   : > { %2019 = vmatprep.mubr.bf16.mxu0 %v4398_v49  ;;  %3093 = vmatpush3.bf16.msra.mxu0 %v4461_v25  ;;  %v1747_v45 = vshll.u32 %v774_v32, 16  ;;  %v1745_v42 = vshrl.u32 %v774_v32, 16 }
 0x15a   : > { %1631 = vmatmul.mubr.bf16.gmra.mrb[40].mxu1 %v4321_v1  ;;  %3094 = vmatprep.subr.bf16.mxu0 %v3465_v30 }
 0x15b   : > { %1638 = vmatprep.mubr.bf16.mxu1 %v4403_v61  ;;  %v1749_v46 = vrot.slane %v1747_v45, 1 }
 0x15d   : > { %3095 = vmatpush3.bf16.msra.mxu0 %v3465_v30 }
 0x160   : > { %2020 = vmatmul.mubr.bf16.gmra.mrb[48].mxu0 %v4321_v1  ;;  %v1750_v1 = vor.u32 %v1749_v46, %v1745_v42 }
 0x161   : > { %2027 = vmatprep.mubr.bf16.mxu0 %v4403_v61 }
 0x162   : > { %1639 = vmatmul.mubr.bf16.gmra.mrb[44].mxu1 %v4344_v37  ;;  %v1754_v48 = vsel %vm807_vm4, %v1750_v1, %v1753_v39 }
 0x163   : > { %3064 = vmatprep.mubr.bf16.mxu1 %v923_v43 }
 0x168   : > { %2028 = vmatmul.mubr.bf16.gmra.mrb[52].mxu0 %v4344_v37 }
 0x169   : > { %2035 = vmatprep.mubr.bf16.mxu0 %v4415_v15 }
 0x16a   : > { %3065 = vmatmul.mubr.bf16.vlgmr.msra.gmra.mrb[0].mxu1 %v4250_v8  ;;  %v1758_v8 = vrot.slane %v774_v32, 1 }
 0x16b   : > { %3120 = vmatpush3.bf16.msra.mxu1 %v4406_v3  ;;  %3068 = vmatprep.mubr.bf16.mxu1 %v4255_v12 }
 0x16c   : > { %3113 = vmatprep.subr.bf16.mxu1 %v4425_v54 }
 0x16f   : > { %3121 = vmatpush3.bf16.msra.mxu1 %v4425_v54 }
 0x170   : > { %3114 = vmatprep.subr.bf16.mxu1 %v4432_v36  ;;  %2036 = vmatmul.mubr.bf16.gmra.mrb[56].mxu0 %v4366_v0 }
 0x171   : > { %2043 = vmatprep.mubr.bf16.mxu0 %v1754_v48 }
 0x172   : > { %3069 = vmatmul.mubr.bf16.gmra.mrb[4].mxu1 %v4284_v7 }
 0x173   : > { %3122 = vmatpush3.bf16.msra.mxu1 %v4432_v36  ;;  %3072 = vmatprep.mubr.bf16.mxu1 %v4295_v21 }
 0x174   : > { %3115 = vmatprep.subr.bf16.mxu1 %v4437_v62 }
 0x177   : > { %3123 = vmatpush3.bf16.msra.mxu1 %v4437_v62 }
 0x178   : > { %3116 = vmatprep.subr.bf16.mxu1 %v4445_v27  ;;  %2044 = vmatmul.mubr.bf16.gmra.mrb[60].mxu0 %v774_v32 }
 0x179   : > { %3096 = vmatprep.mubr.bf16.mxu0 %v4255_v12  ;;  %v1759_v12 = vrot.slane %v806_v41, 1 }
 0x17a   : > { %3073 = vmatmul.mubr.bf16.gmra.mrb[8].mxu1 %v4332_v14 }
 0x17b   : > { %3124 = vmatpush3.bf16.msra.mxu1 %v4445_v27  ;;  %3076 = vmatprep.mubr.bf16.mxu1 %v4337_v18 }
 0x17c   : > { %3117 = vmatprep.subr.bf16.mxu1 %v4454_v51 }
 0x17f   : > { %3125 = vmatpush3.bf16.msra.mxu1 %v4454_v51 }
 0x180   : > { %3118 = vmatprep.subr.bf16.mxu1 %v4461_v25  ;;  %3097 = vmatmul.mubr.bf16.vlgmr.msra.gmra.mrb[64].mxu0 %v4284_v7  ;;  %v1760_v7 = vsel %vm920_vm3, %v1758_v8, %v1759_v12 }
 0x181   : > { %3100 = vmatprep.mubr.bf16.mxu0 %v4295_v21 }
 0x182   : > { %3077 = vmatmul.mubr.bf16.gmra.mrb[12].mxu1 %v4358_v59 }
 0x183   : > { %3126 = vmatpush3.bf16.msra.mxu1 %v4461_v25  ;;  %3104 = vmatprep.mubr.bf16.mxu1 %v4337_v18 }
 0x184   : > { %3119 = vmatprep.subr.bf16.mxu1 %v3465_v30 }
 0x187   : > { %3127 = vmatpush3.bf16.msra.mxu1 %v3465_v30 }
 0x188   : > { %3101 = vmatmul.mubr.bf16.gmra.mrb[68].mxu0 %v4332_v14 }
 0x18a   : > { %3105 = vmatmul.mubr.bf16.vlgmr.msra.gmra.mrb[8].mxu1 %v4358_v59 }
 0x18b   : > { %3108 = vmatprep.mubr.bf16.mxu1 %v4379_v24 }
 0x192   : > { %3109 = vmatmul.mubr.bf16.gmra.mrb[12].mxu1 %v1760_v7 }
 0x1d3   : > { %v2792_v21 = vpop.f32.mrb[0].mxu0 }
 0x1d4   : > { %v2793_v37 = vpop.f32.mrb[1].mxu0 }
 0x1d5   : > { %v2794_v0 = vadd.f32 %v2793_v37, %v2792_v21  ;;  %v2795_v49 = vpop.f32.mrb[2].mxu0 }
 0x1d6   : > { %v2796_v50 = vpop.f32.mrb[3].mxu0 }
 0x1d7   : > { %v2797_v52 = vadd.f32 %v2796_v50, %v2795_v49 }
 0x1db   : > { %v2798_v18 = vpop.f32.mrb[4].mxu0 }
 0x1dc   : > { %v2799_v53 = vpop.f32.mrb[5].mxu0 }
 0x1dd   : > { %v2800_v55 = vadd.f32 %v2799_v53, %v2798_v18  ;;  %v2801_v56 = vpop.f32.mrb[6].mxu0 }
 0x1de   : > { %v2802_v14 = vpop.f32.mrb[7].mxu0 }
 0x1df   : > { %v2803_v57 = vadd.f32 %v2802_v14, %v2801_v56 }
 0x1e3   : > { %v2804_v59 = vpop.f32.mrb[8].mxu0 }
 0x1e4   : > { %v2805_v58 = vpop.f32.mrb[9].mxu0 }
 0x1e5   : > { %v2806_v24 = vadd.f32 %v2805_v58, %v2804_v59  ;;  %v2807_v61 = vpop.f32.mrb[10].mxu0 }
 0x1e6   : > { %v2808_v63 = vpop.f32.mrb[11].mxu0 }
 0x1e7   : > { %v2809_v3 = vadd.f32 %v2808_v63, %v2807_v61 }
 0x1eb   : > { %v2810_v4 = vpop.f32.mrb[12].mxu0 }
 0x1ec   : > { %v2811_v5 = vpop.f32.mrb[13].mxu0 }
 0x1ed   : > { %v4514_v6 = vadd.f32 %v2811_v5, %v2810_v4  ;;  %v2813_v11 = vpop.f32.mrb[14].mxu0 }
 0x1ee   : > { %v2814_v60 = vpop.f32.mrb[15].mxu0 }
 0x1ef   : > { %v4516_v15 = vadd.f32 %v2814_v60, %v2813_v11 }
 0x1f3   : > { %v2816_v16 = vpop.f32.mrb[16].mxu0 }
 0x1f4   : > { %v2817_v26 = vpop.f32.mrb[17].mxu0 }
 0x1f5   : > { %v4518_v17 = vadd.f32 %v2817_v26, %v2816_v16  ;;  %v2819_v19 = vpop.f32.mrb[18].mxu0 }
 0x1f6   : > { %v2820_v54 = vpop.f32.mrb[19].mxu0 }
 0x1f7   : > { %v4520_v20 = vadd.f32 %v2820_v54, %v2819_v19 }
 0x1fb   : > { %v2822_v36 = vpop.f32.mrb[20].mxu0  ;;  %v2872_v27 = vpop.f32.mrb[16].mxu1 }
 0x1fc   : > { %v2823_v62 = vpop.f32.mrb[21].mxu0  ;;  %v2873_v51 = vpop.f32.mrb[17].mxu1 }
 0x1fd   : > { %v4522_v22 = vadd.f32 %v2823_v62, %v2822_v36  ;;  %v2825_v23 = vpop.f32.mrb[22].mxu0  ;;  %v2874_v25 = vadd.f32 %v2873_v51, %v2872_v27  ;;  %v2875_v28 = vpop.f32.mrb[18].mxu1 }
 0x1fe   : > { %v2826_v10 = vpop.f32.mrb[23].mxu0  ;;  %v2876_v30 = vpop.f32.mrb[19].mxu1 }
 0x1ff   : > { %v4524_v29 = vadd.f32 %v2826_v10, %v2825_v23  ;;  %v2877_v9 = vadd.f32 %v2876_v30, %v2875_v28  ;;  %v4526_v31 = vadd.f32 %v2874_v25, %v2794_v0 }
 0x201   : > { %v4528_v33 = vadd.f32 %v2877_v9, %v2797_v52 }
 0x203   : > { %v2828_v13 = vpop.f32.mrb[24].mxu0  ;;  %v2878_v2 = vpop.f32.mrb[20].mxu1 }
 0x204   : > { %v2829_v34 = vpop.f32.mrb[25].mxu0  ;;  %v2879_v40 = vpop.f32.mrb[21].mxu1 }
 0x205   : > { %v4530_v35 = vadd.f32 %v2829_v34, %v2828_v13  ;;  %v2831_v38 = vpop.f32.mrb[26].mxu0  ;;  %v2880_v43 = vadd.f32 %v2879_v40, %v2878_v2  ;;  %v2881_v44 = vpop.f32.mrb[22].mxu1 }
 0x206   : > { %v2832_v32 = vpop.f32.mrb[27].mxu0  ;;  %v2882_v41 = vpop.f32.mrb[23].mxu1 }
 0x207   : > { %v4532_v45 = vadd.f32 %v2832_v32, %v2831_v38  ;;  %v2883_v42 = vadd.f32 %v2882_v41, %v2881_v44  ;;  %v4534_v46 = vadd.f32 %v2880_v43, %v2800_v55 }
 0x209   : > { %v4536_v1 = vadd.f32 %v2883_v42, %v2803_v57 }
 0x20b   : > { %v2834_v47 = vpop.f32.mrb[28].mxu0  ;;  %v2884_v48 = vpop.f32.mrb[24].mxu1 }
 0x20c   : > { %v2835_v39 = vpop.f32.mrb[29].mxu0  ;;  %v2885_v7 = vpop.f32.mrb[25].mxu1 }
 0x20d   : > { %v4538_v8 = vadd.f32 %v2835_v39, %v2834_v47  ;;  %v2837_v12 = vpop.f32.mrb[30].mxu0  ;;  %v2886_v37 = vadd.f32 %v2885_v7, %v2884_v48  ;;  %v2887_v0 = vpop.f32.mrb[26].mxu1 }
 0x20e   : > { %v2838_v21 = vpop.f32.mrb[31].mxu0  ;;  %v2888_v50 = vpop.f32.mrb[27].mxu1 }
 0x20f   : > { %v4540_v49 = vadd.f32 %v2838_v21, %v2837_v12  ;;  %v2889_v52 = vadd.f32 %v2888_v50, %v2887_v0  ;;  %v4542_v18 = vadd.f32 %v2886_v37, %v2806_v24 }
 0x211   : > { %v4544_v55 = vadd.f32 %v2889_v52, %v2809_v3 }
 0x213   : > { %v2952_v53 = vpop.f32.mrb[32].mxu0  ;;  %v2890_v14 = vpop.f32.mrb[28].mxu1 }
 0x214   : > { %v2953_v56 = vpop.f32.mrb[33].mxu0  ;;  %v2891_v58 = vpop.f32.mrb[29].mxu1 }
 0x215   : > { %v4546_v57 = vadd.f32 %v2953_v56, %v2952_v53  ;;  %v2955_v59 = vpop.f32.mrb[34].mxu0  ;;  %v2892_v63 = vadd.f32 %v2891_v58, %v2890_v14  ;;  %v2893_v4 = vpop.f32.mrb[30].mxu1 }
 0x216   : > { %v2956_v61 = vpop.f32.mrb[35].mxu0  ;;  %v2894_v11 = vpop.f32.mrb[31].mxu1 }
 0x217   : > { %v4548_v5 = vadd.f32 %v2956_v61, %v2955_v59  ;;  %v2895_v60 = vadd.f32 %v2894_v11, %v2893_v4  ;;  %v4551_v16 = vadd.f32 %v2892_v63, %v4514_v6 }
 0x219   : > { %v4554_v3 = vadd.f32 %v2895_v60, %v4516_v15 }
 0x21b   : > { %v2958_v24 = vpop.f32.mrb[36].mxu0 }
 0x21c   : > { %v2959_v26 = vpop.f32.mrb[37].mxu0 }
 0x21d   : > { %v2896_v19 = vpop.f32.mrb[32].mxu1  ;;  %v4556_v54 = vadd.f32 %v2959_v26, %v2958_v24  ;;  %v2961_v36 = vpop.f32.mrb[38].mxu0 }
 0x21e   : > { %v2897_v62 = vpop.f32.mrb[33].mxu1  ;;  %v2962_v27 = vpop.f32.mrb[39].mxu0 }
 0x21f   : > { %v2898_v23 = vadd.f32 %v2897_v62, %v2896_v19  ;;  %v2899_v51 = vpop.f32.mrb[34].mxu1  ;;  %v4558_v10 = vadd.f32 %v2962_v27, %v2961_v36 }
 0x220   : > { %v2900_v25 = vpop.f32.mrb[35].mxu1 }
 0x221   : > { %v3163_v28 = vadd.f32 %v2898_v23, %v4518_v17  ;;  %v2901_v6 = vadd.f32 %v2900_v25, %v2899_v51 }
 0x223   : > { %v3169_v30 = vadd.f32 %v2901_v6, %v4520_v20  ;;  %v2964_v9 = vpop.f32.mrb[40].mxu0 }
 0x224   : > { %v2965_v15 = vpop.f32.mrb[41].mxu0 }
 0x225   : > { %v2902_v13 = vpop.f32.mrb[36].mxu1  ;;  %v4562_v34 = vadd.f32 %v2965_v15, %v2964_v9  ;;  %v2967_v2 = vpop.f32.mrb[42].mxu0 }
 0x226   : > { %v2903_v38 = vpop.f32.mrb[37].mxu1  ;;  %v2968_v40 = vpop.f32.mrb[43].mxu0 }
 0x227   : > { %v2904_v32 = vadd.f32 %v2903_v38, %v2902_v13  ;;  %v2905_v43 = vpop.f32.mrb[38].mxu1  ;;  %v4564_v44 = vadd.f32 %v2968_v40, %v2967_v2 }
 0x228   : > { %v2906_v41 = vpop.f32.mrb[39].mxu1 }
 0x229   : > { %v3160_v42 = vadd.f32 %v2904_v32, %v4522_v22  ;;  %v2907_v47 = vadd.f32 %v2906_v41, %v2905_v43 }
 0x22b   : > { %v3166_v17 = vadd.f32 %v2907_v47, %v4524_v29  ;;  %v2970_v39 = vpop.f32.mrb[44].mxu0 }
 0x22c   : > { %v2971_v20 = vpop.f32.mrb[45].mxu0 }
 0x22d   : > { %v2908_v48 = vpop.f32.mrb[40].mxu1  ;;  %v2972_v12 = vadd.f32 %v2971_v20, %v2970_v39  ;;  %v2973_v7 = vpop.f32.mrb[46].mxu0 }
 0x22e   : > { %v2909_v21 = vpop.f32.mrb[41].mxu1  ;;  %v2974_v37 = vpop.f32.mrb[47].mxu0 }
 0x22f   : > { %v2910_v0 = vadd.f32 %v2909_v21, %v2908_v48  ;;  %v2911_v50 = vpop.f32.mrb[42].mxu1  ;;  %v2975_v52 = vadd.f32 %v2974_v37, %v2973_v7 }
 0x230   : > { %v2912_v53 = vpop.f32.mrb[43].mxu1 }
 0x231   : > { %v3175_v56 = vadd.f32 %v2910_v0, %v4530_v35  ;;  %v2913_v14 = vadd.f32 %v2912_v53, %v2911_v50 }
 0x233   : > { %v3181_v59 = vadd.f32 %v2913_v14, %v4532_v45  ;;  %v2976_v22 = vpop.f32.mrb[48].mxu0 }
 0x234   : > { %v2977_v58 = vpop.f32.mrb[49].mxu0 }
 0x235   : > { %v2914_v61 = vpop.f32.mrb[44].mxu1  ;;  %v2978_v29 = vadd.f32 %v2977_v58, %v2976_v22  ;;  %v2979_v63 = vpop.f32.mrb[50].mxu0 }
 0x236   : > { %v2915_v4 = vpop.f32.mrb[45].mxu1  ;;  %v2980_v11 = vpop.f32.mrb[51].mxu0 }
 0x237   : > { %v2916_v60 = vadd.f32 %v2915_v4, %v2914_v61  ;;  %v2917_v24 = vpop.f32.mrb[46].mxu1  ;;  %v2981_v26 = vadd.f32 %v2980_v11, %v2979_v63  ;;  %v4570_v19 = vadd.f32 %v3163_v28, %v2978_v29 }
 0x238   : > { %v2918_v36 = vpop.f32.mrb[47].mxu1 }
 0x239   : > { %v3172_v62 = vadd.f32 %v2916_v60, %v4538_v8  ;;  %v2919_v27 = vadd.f32 %v2918_v36, %v2917_v24  ;;  %v4573_v35 = vadd.f32 %v3169_v30, %v2981_v26 }
 0x23b   : > { %v3178_v45 = vadd.f32 %v2919_v27, %v4540_v49  ;;  %v2982_v23 = vpop.f32.mrb[52].mxu0 }
 0x23c   : > { %v2983_v51 = vpop.f32.mrb[53].mxu0 }
 0x23d   : > { %v3066_v25 = vpop.f32.mrb[0].mxu1  ;;  %v2984_v6 = vadd.f32 %v2983_v51, %v2982_v23  ;;  %v2985_v9 = vpop.f32.mrb[54].mxu0 }
 0x23e   : > { %v3129_v15 = vadd.f32 %v4534_v46, %v3066_v25  ;;  %v1681_v13 = vpop.f32.mrb[1].mxu1  ;;  %v2986_v2 = vpop.f32.mrb[55].mxu0 }
 0x23f   : > { %v3133_v28 = vadd.f32 %v4526_v31, %v1681_v13  ;;  %v3067_v38 = vpop.f32.mrb[2].mxu1  ;;  %v2987_v40 = vadd.f32 %v2986_v2, %v2985_v9  ;;  %v4578_v32 = vadd.f32 %v3160_v42, %v2984_v6 }
 0x240   : > { %v3137_v8 = vadd.f32 %v4536_v1, %v3067_v38  ;;  %v1684_v30 = vpop.f32.mrb[3].mxu1  ;;  %v3130_v49 = vadd.f32 %v3129_v15, %v4556_v54 }
 0x241   : > { %v3141_v43 = vadd.f32 %v4528_v33, %v1684_v30  ;;  %v3134_v41 = vadd.f32 %v3133_v28, %v4546_v57  ;;  %v4584_v47 = vadd.f32 %v3166_v17, %v2987_v40 }
 0x242   : > { %v3138_v46 = vadd.f32 %v3137_v8, %v4558_v10 }
 0x243   : > { %v2988_v39 = vpop.f32.mrb[56].mxu0  ;;  %v3142_v31 = vadd.f32 %v3141_v43, %v4548_v5 }
 0x244   : > { %v2989_v20 = vpop.f32.mrb[57].mxu0 }
 0x245   : > { %v3070_v48 = vpop.f32.mrb[4].mxu1  ;;  %v2990_v42 = vadd.f32 %v2989_v20, %v2988_v39  ;;  %v2991_v7 = vpop.f32.mrb[58].mxu0 }
 0x246   : > { %v3145_v1 = vadd.f32 %v4551_v16, %v3070_v48  ;;  %v1697_v21 = vpop.f32.mrb[5].mxu1  ;;  %v2992_v37 = vpop.f32.mrb[59].mxu0 }
 0x247   : > { %v3149_v54 = vadd.f32 %v4542_v18, %v1697_v21  ;;  %v3071_v33 = vpop.f32.mrb[6].mxu1  ;;  %v2993_v0 = vadd.f32 %v2992_v37, %v2991_v7  ;;  %v4590_v57 = vadd.f32 %v3175_v56, %v2990_v42 }
 0x248   : > { %v3153_v17 = vadd.f32 %v4554_v3, %v3071_v33  ;;  %v1700_v10 = vpop.f32.mrb[7].mxu1  ;;  %v3146_v50 = vadd.f32 %v3145_v1, %v2972_v12 }
 0x249   : > { %v3157_v5 = vadd.f32 %v4544_v55, %v1700_v10  ;;  %v3150_v53 = vadd.f32 %v3149_v54, %v4562_v34  ;;  %v4595_v14 = vadd.f32 %v3181_v59, %v2993_v0 }
 0x24a   : > { %v3154_v22 = vadd.f32 %v3153_v17, %v2975_v52 }
 0x24b   : > { %v2994_v16 = vpop.f32.mrb[60].mxu0  ;;  %v3158_v58 = vadd.f32 %v3157_v5, %v4564_v44 }
 0x24c   : > { %v2995_v61 = vpop.f32.mrb[61].mxu0 }
 0x24d   : > { %v2996_v18 = vadd.f32 %v2995_v61, %v2994_v16  ;;  %v2997_v29 = vpop.f32.mrb[62].mxu0 }
 0x24e   : > { %v2998_v63 = vpop.f32.mrb[63].mxu0 }
 0x24f   : > { %v2999_v56 = vadd.f32 %v2998_v63, %v2997_v29  ;;  %v3173_v4 = vadd.f32 %v3172_v62, %v2996_v18 }
 0x251   : > { %v4598_v3 = vadd.f32 %v3178_v45, %v2999_v56 }
 0x253   : > { %v3098_v12 = vpop.f32.mrb[64].mxu0 }
 0x254   : > { %v3131_v11 = vadd.f32 %v3130_v49, %v3098_v12  ;;  %v2086_v55 = vpop.f32.mrb[65].mxu0 }
 0x255   : > { %v3135_v60 = vadd.f32 %v3134_v41, %v2086_v55  ;;  %v3099_v34 = vpop.f32.mrb[66].mxu0 }
 0x256   : > { %v3139_v59 = vadd.f32 %v3138_v46, %v3099_v34  ;;  %v2089_v24 = vpop.f32.mrb[67].mxu0  ;;  %v2268_v62 = vmul.f32 %v3131_v11, %v3131_v11 }
 0x257   : > { %v3143_v52 = vadd.f32 %v3142_v31, %v2089_v24  ;;  %v2266_v36 = vmul.f32 %v3135_v60, %v3135_v60 }
 0x258   : > { %v2737_v26 = vpack.c.bf16 %v3139_v59, %v3131_v11  ;;  %v2269_v13 = vmul.f32 %v3139_v59, %v3139_v59 }
 0x259   : > { %v2732_v44 = vpack.c.bf16 %v3143_v52, %v3135_v60  ;;  %v2245_v27 = vadd.f32 %v3143_v52, %v3135_v60  ;;  %v2267_v23 = vmul.f32 %v3143_v52, %v3143_v52 }
 0x25a   : > { %2769 = vst [vmem:[%s4602_s10 + $0x8] sm:$0xff] %v2737_v26  }
 0x25b   : > { %2733 = vst [vmem:[%s4602_s10] sm:$0xff] %v2732_v44   ;;  %v2246_v45 = vadd.f32 %v3131_v11, %v2245_v27  ;;  %v2282_v51 = vadd.f32 %v2267_v23, %v2266_v36  ;;  %v3102_v25 = vpop.f32.mrb[68].mxu0 }
 0x25c   : > { %v3147_v6 = vadd.f32 %v3146_v50, %v3102_v25  ;;  %v2102_v9 = vpop.f32.mrb[69].mxu0 }
 0x25d   : > { %v3106_v15 = vpop.f32.mrb[8].mxu1  ;;  %v2283_v2 = vadd.f32 %v2282_v51, %v2268_v62  ;;  %v3151_v28 = vadd.f32 %v3150_v53, %v2102_v9  ;;  %v2247_v38 = vadd.f32 %v3139_v59, %v2246_v45  ;;  %v3103_v40 = vpop.f32.mrb[70].mxu0 }
 0x25e   : > { %v3162_v8 = vadd.f32 %v4578_v32, %v3106_v15  ;;  %v2118_v30 = vpop.f32.mrb[9].mxu1  ;;  %v3155_v49 = vadd.f32 %v3154_v22, %v3103_v40  ;;  %v2105_v43 = vpop.f32.mrb[71].mxu0  ;;  %v2272_v10 = vmul.f32 %v3147_v6, %v3147_v6 }
 0x25f   : > { %v3165_v41 = vadd.f32 %v4570_v19, %v2118_v30  ;;  %v3107_v46 = vpop.f32.mrb[10].mxu1  ;;  %v2248_v39 = vadd.f32 %v3151_v28, %v2247_v38  ;;  %v2270_v31 = vmul.f32 %v3151_v28, %v3151_v28  ;;  %v2284_v20 = vadd.f32 %v2283_v2, %v2269_v13 }
 0x260   : > { %v4609_v48 = vadd.f32 %v4584_v47, %v3107_v46  ;;  %v2121_v42 = vpop.f32.mrb[11].mxu1  ;;  %v2747_v32 = vpack.c.bf16 %v3155_v49, %v3147_v6  ;;  %v3159_v21 = vadd.f32 %v3158_v58, %v2105_v43  ;;  %v2273_v58 = vmul.f32 %v3155_v49, %v3155_v49 }
 0x261   : > { %v3171_v7 = vadd.f32 %v4573_v35, %v2121_v42  ;;  %v2285_v1 = vadd.f32 %v2284_v20, %v2270_v31  ;;  %v2276_v34 = vmul.f32 %v3162_v8, %v3162_v8 }
 0x262   : > { %v2757_v37 = vpack.c.bf16 %v4609_v48, %v3162_v8  ;;  %2771 = vst [vmem:[%s4602_s10 + $0x18] sm:$0xff] %v2747_v32   ;;  %v2742_v54 = vpack.c.bf16 %v3159_v21, %v3151_v28  ;;  %v2249_v33 = vadd.f32 %v3159_v21, %v2248_v39  ;;  %v2271_v0 = vmul.f32 %v3159_v21, %v3159_v21 }
 0x263   : > { %v2752_v19 = vpack.c.bf16 %v3171_v7, %v3165_v41 }
 0x264   : > { %2773 = vst [vmem:[%s4602_s10 + $0x28] sm:$0xff] %v2757_v37   ;;  %2770 = vst [vmem:[%s4602_s10 + $0x10] sm:$0xff] %v2742_v54   ;;  %v2250_v17 = vadd.f32 %v3147_v6, %v2249_v33  ;;  %v2286_v5 = vadd.f32 %v2285_v1, %v2271_v0 }
 0x265   : > { %2772 = vst [vmem:[%s4602_s10 + $0x20] sm:$0xff] %v2752_v19   ;;  %v3110_v47 = vpop.f32.mrb[12].mxu1 }
 0x266   : > { %v4619_v35 = vadd.f32 %v3173_v4, %v3110_v47  ;;  %v2134_v50 = vpop.f32.mrb[13].mxu1  ;;  %v2251_v16 = vadd.f32 %v3155_v49, %v2250_v17  ;;  %v2287_v18 = vadd.f32 %v2286_v5, %v2272_v10  ;;  %v2274_v4 = vmul.f32 %v3165_v41, %v3165_v41 }
 0x267   : > { %v3177_v53 = vadd.f32 %v4590_v57, %v2134_v50  ;;  %v3111_v22 = vpop.f32.mrb[14].mxu1 }
 0x268   : > { %v3180_v61 = vadd.f32 %v4598_v3, %v3111_v22  ;;  %v2137_v29 = vpop.f32.mrb[15].mxu1  ;;  %v2252_v63 = vadd.f32 %v3165_v41, %v2251_v16  ;;  %v2288_v57 = vadd.f32 %v2287_v18, %v2273_v58  ;;  %v2275_v3 = vmul.f32 %v3171_v7, %v3171_v7 }
 0x269   : > { %v3183_v56 = vadd.f32 %v4595_v14, %v2137_v29 }
 0x26a   : > { %v2767_v12 = vpack.c.bf16 %v3180_v61, %v4619_v35  ;;  %v2253_v55 = vadd.f32 %v3171_v7, %v2252_v63  ;;  %v2289_v14 = vadd.f32 %v2288_v57, %v2274_v4 }
 0x26b   : > { %v2762_v11 = vpack.c.bf16 %v3183_v56, %v3177_v53 }
 0x26c   : > { %2775 = vst [vmem:[%s4602_s10 + $0x38] sm:$0xff] %v2767_v12   ;;  %v2254_v60 = vadd.f32 %v3162_v8, %v2253_v55  ;;  %v2290_v59 = vadd.f32 %v2289_v14, %v2275_v3 }
 0x26d   : > { %2774 = vst [vmem:[%s4602_s10 + $0x30] sm:$0xff] %v2762_v11  }
 0x26e   : > { %3597 = shalt.err (!%p3594_p2)
}
 0x26f   : > { %s3598_s8 = scalar_lea.hbm %s4631_s1, 1024  ;;  %s3602_s9 = scalar_lea.hbm %s4851_s15, 4096 }
 0x270   : > { %p3599_p3 = scmp.ne.s32.totalorder %s4631_s1, %s3598_s8  ;;  %p3603_p5 = scmp.lt.u32.totalorder %s4631_s1, %s4851_s15 }
 0x271   : > { %p3604_p4 = scmp.lt.u32.totalorder %s3602_s9, %s3598_s8  ;;  %p3606_p7 = scmp.lt.u32.totalorder %s3598_s8, %s4631_s1 }
 0x272   : > { %p3600_p0 = pnand %p3599_p3, %p4852_p1 }
 0x273   : > { %p3605_p10 = por %p3604_p4, %p3603_p5 }
 0x274   : > { %p3601_p9 = pneg %p3600_p0 }
 0x275   : > { %p3607_p13 = por %p3606_p7, %p3605_p10 }
 0x277   : > { %p3608_p12 = pnand %p3607_p13, %p3601_p9 }
 0x279   : > { %3611 = shalt.err (!%p3608_p12)
}
 0x27a   : > { %s3783_s10 = smov 64   ;;  %s3784_s27 = smov 4   ;;  %v2255_v24 = vadd.f32 %v4609_v48, %v2254_v60  ;;  %v2277_v52 = vmul.f32 %v4609_v48, %v4609_v48  ;;  %v2291_v26 = vadd.f32 %v2290_v59, %v2276_v34  ;;  %v2278_v44 = vmul.f32 %v3177_v53, %v3177_v53 }
 0x27b   : > { %3218 = dma.vmem_to_hbm [thread:$0]  (%p4852_p1), %s4626_s13, 1024, %s4631_s1, %s2306_s17, %s3783_s10, %s3783_s10, %s3784_s27   ;;  %v2279_v62 = vmul.f32 %v3183_v56, %v3183_v56  ;;  %v2280_v25 = vmul.f32 %v4619_v35, %v4619_v35  ;;  %v2281_v15 = vmul.f32 %v3180_v61, %v3180_v61 }
 0x27c   : > { %v2256_v36 = vadd.f32 %v3177_v53, %v2255_v24  ;;  %v2292_v27 = vadd.f32 %v2291_v26, %v2277_v52  ;;  %s2576_s30 = sshll.u32 %s4183_s19, 1  ;;  %s2701_s25 = sshll.u32 %s4850_s14, 1 }
 0x27d   : > { %s2341_s13 = sadd.s32 %s4849_s4, %s2701_s25  ;;  %s474_s24 = scalar_lea.vmem [#allocation11], %s2576_s30 }
 0x27e   : > { %v2257_v23 = vadd.f32 %v3183_v56, %v2256_v36  ;;  %v2293_v45 = vadd.f32 %v2292_v27, %v2278_v44  ;;  %s2702_s5 = sshll.u32 %s2341_s13, 5  ;;  %s2345_s11 = sshll.u32 %s474_s24, 4  ;;  %s4673_s11 = int_to_ptr.vmem [resolvable:$true] %s2345_s11 }
 0x27f   : > { %s4853_s0 = sld [smem:[#allocation40_spill]]  ;;  %s2311_s4 = scalar_lea.sflag [#allocation12], %s4183_s19 }
 0x280   : > { %v2258_v51 = vadd.f32 %v4619_v35, %v2257_v23  ;;  %v2294_v6 = vadd.f32 %v2293_v45, %v2279_v62  ;;  %s3612_s14 = scalar_lea.vmem %s4673_s11, 32  ;;  %s3785_s7 = smov [#allocation11]  }
 0x281   : > { %p3613_p8 = scmp.ne.s32.totalorder %s4673_s11, %s3612_s14  ;;  %s3616_s20 = sshll.u32 %s3785_s7, 4  ;;  %s3617_s20 = int_to_ptr.vmem [resolvable:$false] %s3616_s20 }
 0x282   : > { %v2259_v9 = vadd.f32 %v3180_v61, %v2258_v51  ;;  %v2295_v13 = vadd.f32 %v2294_v6, %v2280_v25  ;;  %s3618_s8 = scalar_lea.vmem %s3617_s20, 64  ;;  %p3619_p2 = scmp.lt.s32.totalorder %s4673_s11, %s3617_s20 }
 0x283   : > { %p3614_p11 = pnand %p3613_p8, %p4852_p1  ;;  %p3620_p3 = scmp.lt.s32.totalorder %s3618_s8, %s3612_s14 }
 0x284   : > { %v2260_v2 = vrot.slane %v2259_v9, 4  ;;  %v2296_v28 = vadd.f32 %v2295_v13, %v2281_v15 }
 0x285   : > { %s4671_s2 = scalar_lea.hbm %s4853_s0, %s2702_s5  ;;  %p3615_p6 = pneg %p3614_p11 }
 0x286   : > { %v2261_v38 = vadd.f32 %v2260_v2, %v2259_v9  ;;  %v2297_v40 = vrot.slane %v2296_v28, 4  ;;  %p3621_p0 = por %p3620_p3, %p3619_p2 }
 0x288   : > { %v2262_v8 = vrot.slane %v2261_v38, 2  ;;  %v2298_v30 = vadd.f32 %v2297_v40, %v2296_v28  ;;  %p3622_p9 = pnand %p3621_p0, %p3615_p6 }
 0x28a   : > { %v2263_v49 = vadd.f32 %v2262_v8, %v2261_v38  ;;  %v2299_v43 = vrot.slane %v2298_v30, 2 }
 0x28c   : > { %v2264_v41 = vrot.slane %v2263_v49, 1  ;;  %v2300_v46 = vadd.f32 %v2299_v43, %v2298_v30 }
 0x28e   : > { %v2301_v39 = vrot.slane %v2300_v46, 1  ;;  %v2265_v31 = vadd.f32 %v2264_v41, %v2263_v49 }
 0x290   : > { %v2302_v20 = vadd.f32 %v2301_v39, %v2300_v46 }
 0x292   : > { %v2303_v48 = vsel %vm762_vm1, %v2265_v31, %v2302_v20 }
 0x293   : > { %2304 = vst [vmem:[%s474_s24] sm:$0x3] %v2303_v48 }
 0x294   : > { %3625 = shalt.err (!%p3622_p9)
}
 0x295   : > { %s3626_s19 = scalar_lea.hbm %s4671_s2, 32  ;;  %s3630_s9 = scalar_lea.hbm %s4853_s0, 128 }
 0x296   : > { %p3627_p5 = scmp.ne.s32.totalorder %s4671_s2, %s3626_s19  ;;  %p3631_p7 = scmp.lt.u32.totalorder %s4671_s2, %s4853_s0 }
 0x297   : > { %p3632_p13 = scmp.lt.u32.totalorder %s3630_s9, %s3626_s19  ;;  %p3634_p8 = scmp.lt.u32.totalorder %s3626_s19, %s4671_s2 }
 0x298   : > { %p3628_p4 = pnand %p3627_p5, %p4852_p1 }
 0x299   : > { %p3633_p12 = por %p3632_p13, %p3631_p7 }
 0x29a   : > { %p3629_p10 = pneg %p3628_p4 }
 0x29b   : > { %p3635_p11 = por %p3634_p8, %p3633_p12 }
 0x29d   : > { %p3636_p6 = pnand %p3635_p11, %p3629_p10 }
 0x29f   : > { %3639 = shalt.err (!%p3636_p6)
}
 0x2a0   : > { %3219 = dma.vmem_to_hbm [thread:$0]  (%p4852_p1), %s4673_s11, 32, %s4671_s2, %s2311_s4  }
 0x2a1 PF: > { %s4854_s10 = sld [smem:[#allocation34_spill]]  ;;  %p3246_p2 = scmp.ge.s32.totalorder %s3774_s12, 2 }
 0x2a2   : > { %s2357_s27 = sand.u32 1, %s3746_s28  }
 0x2a3   : > { %s2358_s30 = scalar_lea.sflag [#allocation4], %s2357_s27 }
 0x2a7   : > { %p4855_p3 = scmp.ne.s32.totalorder %s4854_s10, 0 }
 0x2a9   : > { %p3237_p0 = pnand %p3246_p2, %p4855_p3 }
 0x2ab   : > { %3713 = dma.done.wait (!%p3237_p0), %s2358_s30, 1024  }
 0x2ac   : > { %3715 = vsyncadd (!%p3237_p0), %s2358_s30, 4294966272  ;;  %s2367_s25 = scalar_lea.sflag [#allocation12], %s2357_s27 }
 0x2ad   : > { %3717 = dma.done.wait (!%p3237_p0), %s2367_s25, 32  }
 0x2ae   : > { %3719 = vsyncadd (!%p3237_p0), %s2367_s25, 4294967264  ;;  %s31_s12 = sadd.s32 1, %s3774_s12   ;;  %s4857_s3 = sld [smem:[#allocation20_spill]] }
 0x2af   : > { %p4703_p9 = scmp.ge.s32.totalorder %s31_s12, 6   ;;  %s4858_s4 = sld [smem:[#allocation21_spill]] }
 0x2b0   : > { %s4859_s13 = sld [smem:[#allocation22_spill]]  ;;  %s4860_s27 = sld [smem:[#allocation32_spill]] }
 0x2b1   : > { %s4861_s5 = sld [smem:[#allocation23_spill]]  ;;  %s4862_s30 = sld [smem:[#allocation33_spill]] }
 0x2b2   : > { %s4863_s8 = sld [smem:[#allocation26_spill]]  ;;  %s4864_s9 = sld [smem:[#allocation27_spill]] }
 0x2b3   : > { %s4865_s10 = sld [smem:[#allocation28_spill]]  ;;  %s4866_s11 = sld [smem:[#allocation29_spill]] }
 0x2b4   : > { %s4867_s24 = smov %s4887_s18  ;;  %s4868_s25 = smov %s3738_s26 }
 0x2b5   : > { %s4870_s28 = smov %s3750_s29  ;;  %30 = sbr.rel (!%p4703_p9) target bundleno = 22 (0x16), region = 142 }
 0x2b6   : > { %s4869_s26 = smov %s4859_s13 }
 0x2b7   : > { %s4871_s29 = smov %s4861_s5 }
 0x2bc   :  { %2372 = vsyncpa [#allocation3], 1 }
 0x2bd   :  { %2374 = vsyncpa [#allocation3 + $0x1], 1 }
 0x2be   :  { %2375 = vsyncpa [#allocation6], 1 }
 0x2bf   :  { %2377 = vsyncpa [#allocation6 + $0x1], 1 }
 0x2c0   :  { %2378 = vsyncpa [#allocation9], 1 }
 0x2c1   :  { %2379 = vsyncpa [#allocation4], 1 }
 0x2c2   :  { %2381 = vsyncpa [#allocation4 + $0x1], 1 }
 0x2c3   :  { %2382 = vsyncpa [#allocation12], 1 }
 0x2c4   :  { %2384 = vsyncpa [#allocation12 + $0x1], 1 }

</bundles_post_ra>
